<compile_context>
chip_gen: v6e
topology: v6e:2x2x1
jax: 0.10.0
libtpu: 0.0.40
codegen_flags: <defaults>
</compile_context>

<pallas_src>
import functools

import jax
import jax.numpy as jnp
from jax import lax
from jax.experimental import pallas as pl
from jax.experimental.pallas import tpu as pltpu

# ---------------------------------------------------------------------------
# Small synthetic configs (structure of CLIPL_CONFIG / CLIPG_CONFIG / T5_CONFIG,
# scaled down, lane-dense).  T5 disabled (shared.opts.sd3_enable_t5=False).
# ---------------------------------------------------------------------------
SEQ = 8            # context length (77 in the real model)
VOCAB = 512
CLIPL_SMALL = dict(hidden=128, inter=256, heads=2, layers=3, act="quick_gelu")
CLIPG_SMALL = dict(hidden=128, inter=256, heads=4, layers=3, act="gelu")
T5_DMODEL_SMALL = 384          # stands in for 4096; >= hidden_l + hidden_g
START_TOK = VOCAB - 2
END_TOK = VOCAB - 1
DTYPE = jnp.float32            # activation / LN / bias dtype
WEIGHT_DTYPE = jnp.bfloat16    # matmul weight dtype (MXU input)
SOFTMAX_APPROX_RECIP = True    # set False for tight-tolerance validation vs torch


def _ln(x, w, b, eps=1e-5):
    mu = jnp.mean(x, axis=-1, keepdims=True)
    var = jnp.mean((x - mu) ** 2, axis=-1, keepdims=True)
    return (x - mu) * lax.rsqrt(var + eps) * w + b


# ---------------------------------------------------------------------------
# Fused CLIP text encoder kernel
#   grid = (L,)  (layers, 'arbitrary'); full prompt batch inside the block.
#   Activation (B*S, D) carried across layers in a VMEM scratch.
#   Outputs: penultimate hidden state [B*S, D], pooled (+proj) [B, D].
# ---------------------------------------------------------------------------
def clip_encoder_kernel(eos_ref,            # SMEM [B] int32 (scalar prefetch)
                        x_ref,              # (B*S, D) token+pos embeddings
                        mask_ref,           # (S, S) additive causal mask
                        wattn_ref,          # (D, 4D) bf16: [wq*scale | wk | wv | wo]
                        wfc1_ref,           # (D, I)  bf16
                        wfc2_ref,           # (I, D)  bf16
                        ln_ref,             # (4, D)  f32: ln1_w, ln1_b, ln2_w, ln2_b
                        bias_ref,           # (1, 5D+I) f32: bq|bk|bv | bo | b1 | b2
                        lnf_ref,            # (2, D)  f32: final LN w, b
                        *rest,
                        num_heads, act, batch, seq, project_pooled, approx_recip):
    if project_pooled:
        proj_ref, penult_ref, pooled_ref, x_scr = rest
    else:
        proj_ref = None
        penult_ref, pooled_ref, x_scr = rest

    l = pl.program_id(0)

    # Load embeddings into the resident activation scratch at layer 0.
    @pl.when(l == 0)
    def _():
        x_scr[...] = x_ref[...].astype(jnp.float32)

    x = x_scr[...]                         # hidden_states[l], (B*S, D)
    d = x.shape[-1]
    i_dim = wfc1_ref.shape[-1]
    hd = d // num_heads

    bqkv = bias_ref[:, 0:3 * d]
    bo = bias_ref[:, 3 * d:4 * d]
    b1 = bias_ref[:, 4 * d:4 * d + i_dim]
    b2 = bias_ref[:, 4 * d + i_dim:5 * d + i_dim]

    # ---- pre-LN causal multi-head self-attention ---------------------------
    h = _ln(x, ln_ref[0:1, :], ln_ref[1:2, :])
    # Single fused QKV matmul, M = B*S (1/sqrt(hd) already folded into wq/bq).
    qkv = jnp.dot(h.astype(WEIGHT_DTYPE), wattn_ref[:, 0:3 * d],
                  preferred_element_type=jnp.float32) + bqkv       # (B*S, 3D)

    add_mask = mask_ref[...][None, :, :]                            # (1, S, S)
    attn_chunks = []
    for b in range(batch):                                          # static unroll
        qkv_b = qkv[b * seq:(b + 1) * seq]                          # (S, 3D)
        qh = jnp.transpose(jnp.reshape(qkv_b[:, 0:d], (seq, num_heads, hd)), (1, 0, 2))
        kh = jnp.transpose(jnp.reshape(qkv_b[:, d:2 * d], (seq, num_heads, hd)), (1, 0, 2))
        vh = jnp.transpose(jnp.reshape(qkv_b[:, 2 * d:3 * d], (seq, num_heads, hd)), (1, 0, 2))
        sc = jnp.einsum("hqd,hkd->hqk", qh, kh,
                        preferred_element_type=jnp.float32) + add_mask
        sc = sc - jnp.max(sc, axis=-1, keepdims=True)
        p = jnp.exp(sc)
        denom = jnp.sum(p, axis=-1, keepdims=True)
        if approx_recip:
            p = p * pl.reciprocal(denom, approx=True)
        else:
            p = p / denom
        av = jnp.einsum("hqk,hkd->hqd", p, vh,
                        preferred_element_type=jnp.float32)         # (H, S, hd)
        attn_chunks.append(jnp.reshape(jnp.transpose(av, (1, 0, 2)), (seq, d)))
    attn = jnp.concatenate(attn_chunks, axis=0)                     # (B*S, D)

    a = jnp.dot(attn.astype(WEIGHT_DTYPE), wattn_ref[:, 3 * d:4 * d],
                preferred_element_type=jnp.float32) + bo
    x_attn = x + a

    # ---- pre-LN MLP ---------------------------------------------------------
    h = _ln(x_attn, ln_ref[2:3, :], ln_ref[3:4, :])
    h1 = jnp.dot(h.astype(WEIGHT_DTYPE), wfc1_ref[...],
                 preferred_element_type=jnp.float32) + b1
    if act == "gelu":                      # CLIP-G: exact (erf) gelu
        h1 = jax.nn.gelu(h1, approximate=False)
    else:                                  # CLIP-L: quick_gelu
        h1 = h1 * jax.nn.sigmoid(1.702 * h1)
    h2 = jnp.dot(h1.astype(WEIGHT_DTYPE), wfc2_ref[...],
                 preferred_element_type=jnp.float32) + b2
    x_new = x_attn + h2                    # hidden_states[l+1]
    x_scr[...] = x_new

    # ---- epilogue: last layer only ------------------------------------------
    @pl.when(l == pl.num_programs(0) - 1)
    def _():
        # hidden_states[-2] == the activation that ENTERED the last layer.
        penult_ref[...] = x.astype(penult_ref.dtype)
        # pooled: final-LN(last hidden state) at the EOS row (+ optional proj).
        for b in range(batch):
            row = x_scr[pl.ds(b * seq + eos_ref[b], 1), :]           # (1, D)
            row = _ln(row, lnf_ref[0:1, :], lnf_ref[1:2, :])
            if project_pooled:
                row = jnp.dot(row.astype(WEIGHT_DTYPE), proj_ref[...],
                              preferred_element_type=jnp.float32)
            pooled_ref[b:b + 1, :] = row.astype(pooled_ref.dtype)


def clip_encode_batched(token_ids, eos_idx, params, cfg, project_pooled):
    """token_ids: [B, S] int32, eos_idx: [B] int32.

    Returns (penultimate hidden [B, S, D], pooled [B, D])."""
    B, S = token_ids.shape
    D, I, L, H = cfg["hidden"], cfg["inter"], cfg["layers"], cfg["heads"]

    # Embedding gather + positional embedding: cheap glue, plain JAX.
    x = jnp.take(params["tok_emb"], token_ids, axis=0) + params["pos_emb"][None]
    x = x.reshape(B * S, D).astype(DTYPE)

    # Precomputed additive causal mask (feedback item: no per-layer iota/select).
    row_i = lax.broadcasted_iota(jnp.int32, (S, S), 0)
    col_i = lax.broadcasted_iota(jnp.int32, (S, S), 1)
    mask = jnp.where(col_i <= row_i, 0.0, -1e30).astype(jnp.float32)

    def layer_spec(shape):                 # blocks indexed by the layer grid axis
        return pl.BlockSpec((None,) + shape,
                            lambda li, eos: (li,) + (0,) * len(shape))

    def shared_spec(shape):                # one block shared by every grid step
        return pl.BlockSpec(shape, lambda li, eos: (0,) * len(shape))

    in_specs = [
        shared_spec((B * S, D)),           # x (whole prompt batch)
        shared_spec((S, S)),               # additive causal mask
        layer_spec((D, 4 * D)),            # wq|wk|wv|wo
        layer_spec((D, I)),                # fc1
        layer_spec((I, D)),                # fc2
        layer_spec((4, D)),                # ln1_w, ln1_b, ln2_w, ln2_b
        layer_spec((1, 5 * D + I)),        # bq|bk|bv | bo | b1 | b2
        shared_spec((2, D)),               # final LN w, b
    ]
    args = [x, mask, params["w_attn"], params["w_fc1"], params["w_fc2"],
            params["ln_wb"], params["bias"], params["ln_f"]]
    if project_pooled:
        in_specs.append(shared_spec((D, D)))
        args.append(params["text_proj"])

    out_specs = (
        pl.BlockSpec((B * S, D), lambda li, eos: (0, 0)),    # penultimate
        pl.BlockSpec((B, D), lambda li, eos: (0, 0)),        # pooled
    )
    out_shape = (jax.ShapeDtypeStruct((B * S, D), DTYPE),
                 jax.ShapeDtypeStruct((B, D), DTYPE))

    grid_spec = pltpu.PrefetchScalarGridSpec(
        num_scalar_prefetch=1,             # eos_idx -> SMEM
        grid=(L,),                         # layers only; batch folded into block
        in_specs=in_specs,
        out_specs=out_specs,
        scratch_shapes=[pltpu.VMEM((B * S, D), jnp.float32)],   # resident activation
    )

    penult, pooled = pl.pallas_call(
        functools.partial(clip_encoder_kernel, num_heads=H, act=cfg["act"],
                          batch=B, seq=S, project_pooled=project_pooled,
                          approx_recip=SOFTMAX_APPROX_RECIP),
        grid_spec=grid_spec,
        out_shape=out_shape,
        compiler_params=pltpu.CompilerParams(
            dimension_semantics=("arbitrary",),
            # Real-size configs want ~100 MiB on v5e/v6e; 48 MiB is plenty here
            # and above the default scoped limits on every chip.
            vmem_limit_bytes=48 * 1024 * 1024),
    )(eos_idx, *args)
    return penult.reshape(B, S, D), pooled


# ---------------------------------------------------------------------------
# Deterministic parameter construction (weights bf16, stacked/fused per layer)
# ---------------------------------------------------------------------------
def _init_clip(key, cfg, with_projection):
    d, i_dim, L, H = cfg["hidden"], cfg["inter"], cfg["layers"], cfg["heads"]
    scale = 1.0 / ((d // H) ** 0.5)
    cnt = [0]

    def nk():
        cnt[0] += 1
        return jax.random.fold_in(key, cnt[0])

    def rnd(shape, s=0.02):
        return jax.random.normal(nk(), shape, jnp.float32) * s

    # 1/sqrt(head_dim) folded into wq / bq at init time (feedback item).
    wq = rnd((L, d, d)) * scale
    wk = rnd((L, d, d))
    wv = rnd((L, d, d))
    wo = rnd((L, d, d))
    w_attn = jnp.concatenate([wq, wk, wv, wo], axis=-1).astype(WEIGHT_DTYPE)

    bq = rnd((L, 1, d), 0.002) * scale
    bk = rnd((L, 1, d), 0.002)
    bv = rnd((L, 1, d), 0.002)
    bo = rnd((L, 1, d), 0.002)
    b1 = rnd((L, 1, i_dim), 0.002)
    b2 = rnd((L, 1, d), 0.002)
    bias = jnp.concatenate([bq, bk, bv, bo, b1, b2], axis=-1).astype(DTYPE)

    ln_wb = jnp.stack([jnp.ones((L, d)), jnp.zeros((L, d)),
                       jnp.ones((L, d)), jnp.zeros((L, d))], axis=1).astype(DTYPE)

    params = {
        "tok_emb": rnd((VOCAB, d)).astype(DTYPE),
        "pos_emb": rnd((SEQ, d), 0.01).astype(DTYPE),
        "w_attn": w_attn,
        "w_fc1": rnd((L, d, i_dim)).astype(WEIGHT_DTYPE),
        "w_fc2": rnd((L, i_dim, d)).astype(WEIGHT_DTYPE),
        "ln_wb": ln_wb,
        "bias": bias,
        "ln_f": jnp.concatenate([jnp.ones((1, d)), jnp.zeros((1, d))],
                                axis=0).astype(DTYPE),
    }
    if with_projection:
        params["text_proj"] = rnd((d, d)).astype(WEIGHT_DTYPE)
    return params


# ---------------------------------------------------------------------------
# Tokenizer stand-in.  TODO(synk): real SD3Tokenizer does CLIP/T5 BPE with
# attention-weight syntax; here we deterministically hash characters to ids.
# ---------------------------------------------------------------------------
def fake_tokenize(prompt):
    ids = [START_TOK]
    for ch in prompt[: SEQ - 2]:
        ids.append((ord(ch) * 31 + 7) % (VOCAB - 2))
    eos_idx = len(ids)
    ids.append(END_TOK)
    while len(ids) < SEQ:
        ids.append(0)
    return ids, eos_idx


# ---------------------------------------------------------------------------
# SD3Cond.forward equivalent (all prompts batched into one encoder call each)
# ---------------------------------------------------------------------------
def sd3_cond_forward(prompts, clip_l_params, clip_g_params):
    toks = [fake_tokenize(p) for p in prompts]
    ids = jnp.asarray([t[0] for t in toks], jnp.int32)        # [B, S]
    eos = jnp.asarray([t[1] for t in toks], jnp.int32)        # [B]
    B = len(prompts)

    # TODO(synk): encode_token_weights also rescales per-token weights; with
    # plain prompts all weights are 1.0 so it is the identity here.
    l_out, l_pooled = clip_encode_batched(ids, eos, clip_l_params, CLIPL_SMALL,
                                          project_pooled=False)
    g_out, g_pooled = clip_encode_batched(ids, eos, clip_g_params, CLIPG_SMALL,
                                          project_pooled=True)

    # t5xxl disabled -> zeros branch of the reference forward
    t5_out = jnp.zeros((B, SEQ, T5_DMODEL_SMALL), l_out.dtype)

    lg_out = jnp.concatenate([l_out, g_out], axis=-1)                         # [B,S,Dl+Dg]
    lg_out = jnp.pad(lg_out,
                     ((0, 0), (0, 0), (0, T5_DMODEL_SMALL - lg_out.shape[-1])))
    lgt_out = jnp.concatenate([lg_out, t5_out], axis=-2)                      # [B,2S,T5]
    vector_out = jnp.concatenate([l_pooled, g_pooled], axis=-1)               # [B,Dl+Dg]

    return [{"crossattn": lgt_out[i], "vector": vector_out[i]} for i in range(B)]


# ---------------------------------------------------------------------------
if __name__ == "__main__":
    key = jax.random.PRNGKey(0)
    kl, kg = jax.random.split(key)
    clip_l_params = _init_clip(kl, CLIPL_SMALL, with_projection=False)
    clip_g_params = _init_clip(kg, CLIPG_SMALL, with_projection=True)

    prompts = ["a photo of a cat", "painting"]
    out = sd3_cond_forward(prompts, clip_l_params, clip_g_params)
    for r in out:
        jax.block_until_ready(r["crossattn"])
        jax.block_until_ready(r["vector"])

    assert out[0]["crossattn"].shape == (2 * SEQ, T5_DMODEL_SMALL)
    assert out[0]["vector"].shape == (CLIPL_SMALL["hidden"] + CLIPG_SMALL["hidden"],)
    assert out[0]["crossattn"].dtype == DTYPE
    assert not bool(jnp.any(jnp.isnan(out[0]["crossattn"])))
    assert not bool(jnp.any(jnp.isnan(out[0]["vector"])))
    print("KERNEL_OK")
</pallas_src>

<mosaic_0001>
module attributes {stable_mosaic.version = 11 : i64} {
  func.func @clip_encoder_kernel(%arg0: i32, %arg1: memref<2xi32, #tpu.memory_space<smem>>, %arg2: memref<16x128xf32, #tpu.memory_space<vmem>>, %arg3: memref<8x8xf32, #tpu.memory_space<vmem>>, %arg4: memref<1x128x512xbf16, #tpu.memory_space<vmem>>, %arg5: memref<1x128x256xbf16, #tpu.memory_space<vmem>>, %arg6: memref<1x256x128xbf16, #tpu.memory_space<vmem>>, %arg7: memref<1x4x128xf32, #tpu.memory_space<vmem>>, %arg8: memref<1x1x896xf32, #tpu.memory_space<vmem>>, %arg9: memref<2x128xf32, #tpu.memory_space<vmem>>, %arg10: memref<16x128xf32, #tpu.memory_space<vmem>>, %arg11: memref<2x128xf32, #tpu.memory_space<vmem>>, %arg12: memref<16x128xf32, #tpu.memory_space<vmem>>) attributes {dimension_semantics = [#tpu.dimension_semantics<arbitrary>], iteration_bounds = array<i64: 3>, scalar_prefetch = 1 : i64, scratch_operands = 1 : i64, tpu.core_type = #tpu.core_type<tc>, window_params = [{pipeline_mode = #tpu.pipeline_mode<synchronous>, transform_indices = @transform_0, window_bounds = array<i64: 16, 128>}, {pipeline_mode = #tpu.pipeline_mode<synchronous>, transform_indices = @transform_1, window_bounds = array<i64: 8, 8>}, {transform_indices = @transform_2, window_bounds = array<i64: 1, 128, 512>}, {transform_indices = @transform_3, window_bounds = array<i64: 1, 128, 256>}, {transform_indices = @transform_4, window_bounds = array<i64: 1, 256, 128>}, {transform_indices = @transform_5, window_bounds = array<i64: 1, 4, 128>}, {transform_indices = @transform_6, window_bounds = array<i64: 1, 1, 896>}, {pipeline_mode = #tpu.pipeline_mode<synchronous>, transform_indices = @transform_7, window_bounds = array<i64: 2, 128>}, {pipeline_mode = #tpu.pipeline_mode<synchronous>, transform_indices = @transform_8, window_bounds = array<i64: 16, 128>}, {pipeline_mode = #tpu.pipeline_mode<synchronous>, transform_indices = @transform_9, window_bounds = array<i64: 2, 128>}]} {
    %c0_i32 = arith.constant 0 : i32
    %0 = arith.cmpi eq, %arg0, %c0_i32 : i32
    %1 = arith.extui %0 : i1 to i32
    %c0_i32_0 = arith.constant 0 : i32
    %2 = arith.cmpi ne, %1, %c0_i32_0 : i32
    scf.if %2 {
      %c0_60 = arith.constant 0 : index
      %c0_61 = arith.constant 0 : index
      %157 = vector.load %arg2[%c0_60, %c0_61] : memref<16x128xf32, #tpu.memory_space<vmem>>, vector<16x128xf32>
      %c0_62 = arith.constant 0 : index
      %c0_63 = arith.constant 0 : index
      %158 = vector.load %arg12[%c0_62, %c0_63] : memref<16x128xf32, #tpu.memory_space<vmem>>, vector<16x128xf32>
      tpu.vector_store %arg12[%c0_62, %c0_63], %157 {strides = array<i32>} : memref<16x128xf32, #tpu.memory_space<vmem>>, vector<16x128xf32>,
    } else {
    }
    %c0 = arith.constant 0 : index
    %c0_1 = arith.constant 0 : index
    %3 = vector.load %arg12[%c0, %c0_1] : memref<16x128xf32, #tpu.memory_space<vmem>>, vector<16x128xf32>
    %c0_2 = arith.constant 0 : index
    %c0_3 = arith.constant 0 : index
    %c0_4 = arith.constant 0 : index
    %4 = vector.load %arg8[%c0_2, %c0_3, %c0_4] : memref<1x1x896xf32, #tpu.memory_space<vmem>>, vector<1x1x384xf32>
    %5 = vector.shape_cast %4 : vector<1x1x384xf32> to vector<1x384xf32>
    %c0_5 = arith.constant 0 : index
    %c0_6 = arith.constant 0 : index
    %c384 = arith.constant 384 : index
    %6 = vector.load %arg8[%c0_5, %c0_6, %c384] : memref<1x1x896xf32, #tpu.memory_space<vmem>>, vector<1x1x128xf32>
    %7 = vector.shape_cast %6 : vector<1x1x128xf32> to vector<1x128xf32>
    %c0_7 = arith.constant 0 : index
    %c0_8 = arith.constant 0 : index
    %c512 = arith.constant 512 : index
    %8 = vector.load %arg8[%c0_7, %c0_8, %c512] : memref<1x1x896xf32, #tpu.memory_space<vmem>>, vector<1x1x256xf32>
    %9 = vector.shape_cast %8 : vector<1x1x256xf32> to vector<1x256xf32>
    %c0_9 = arith.constant 0 : index
    %c0_10 = arith.constant 0 : index
    %c768 = arith.constant 768 : index
    %10 = vector.load %arg8[%c0_9, %c0_10, %c768] : memref<1x1x896xf32, #tpu.memory_space<vmem>>, vector<1x1x128xf32>
    %11 = vector.shape_cast %10 : vector<1x1x128xf32> to vector<1x128xf32>
    %c0_11 = arith.constant 0 : index
    %c0_12 = arith.constant 0 : index
    %c0_13 = arith.constant 0 : index
    %12 = vector.load %arg7[%c0_11, %c0_12, %c0_13] : memref<1x4x128xf32, #tpu.memory_space<vmem>>, vector<1x1x128xf32>
    %13 = vector.shape_cast %12 : vector<1x1x128xf32> to vector<1x128xf32>
    %c0_14 = arith.constant 0 : index
    %c1 = arith.constant 1 : index
    %c0_15 = arith.constant 0 : index
    %14 = vector.load %arg7[%c0_14, %c1, %c0_15] : memref<1x4x128xf32, #tpu.memory_space<vmem>>, vector<1x1x128xf32>
    %15 = vector.shape_cast %14 : vector<1x1x128xf32> to vector<1x128xf32>
    %cst = arith.constant dense<0.000000e+00> : vector<16xf32>
    %16 = vector.multi_reduction <add>, %3, %cst [1] : vector<16x128xf32> to vector<16xf32>
    %17 = vector.shape_cast %16 : vector<16xf32> to vector<16x1xf32>
    %cst_16 = arith.constant 1.280000e+02 : f32
    %18 = vector.broadcast %cst_16 : f32 to vector<16x1xf32>
    %19 = arith.divf %17, %18 : vector<16x1xf32>
    %20 = vector.broadcast %19 : vector<16x1xf32> to vector<16x128xf32>
    %21 = arith.subf %3, %20 : vector<16x128xf32>
    %22 = arith.mulf %21, %21 : vector<16x128xf32>
    %cst_17 = arith.constant dense<0.000000e+00> : vector<16xf32>
    %23 = vector.multi_reduction <add>, %22, %cst_17 [1] : vector<16x128xf32> to vector<16xf32>
    %24 = vector.shape_cast %23 : vector<16xf32> to vector<16x1xf32>
    %cst_18 = arith.constant 1.280000e+02 : f32
    %25 = vector.broadcast %cst_18 : f32 to vector<16x1xf32>
    %26 = arith.divf %24, %25 : vector<16x1xf32>
    %27 = vector.broadcast %19 : vector<16x1xf32> to vector<16x128xf32>
    %28 = arith.subf %3, %27 : vector<16x128xf32>
    %cst_19 = arith.constant 9.99999974E-6 : f32
    %29 = vector.broadcast %cst_19 : f32 to vector<16x1xf32>
    %30 = arith.addf %26, %29 : vector<16x1xf32>
    %31 = math.rsqrt %30 : vector<16x1xf32>
    %32 = vector.broadcast %31 : vector<16x1xf32> to vector<16x128xf32>
    %33 = arith.mulf %28, %32 : vector<16x128xf32>
    %34 = vector.broadcast %13 : vector<1x128xf32> to vector<16x128xf32>
    %35 = arith.mulf %33, %34 : vector<16x128xf32>
    %36 = vector.broadcast %15 : vector<1x128xf32> to vector<16x128xf32>
    %37 = arith.addf %35, %36 : vector<16x128xf32>
    %38 = arith.truncf %37 : vector<16x128xf32> to vector<16x128xbf16>
    %c0_20 = arith.constant 0 : index
    %c0_21 = arith.constant 0 : index
    %c0_22 = arith.constant 0 : index
    %39 = vector.load %arg4[%c0_20, %c0_21, %c0_22] : memref<1x128x512xbf16, #tpu.memory_space<vmem>>, vector<1x128x384xbf16>
    %40 = vector.shape_cast %39 : vector<1x128x384xbf16> to vector<128x384xbf16>
    %cst_23 = arith.constant dense<0.000000e+00> : vector<16x384xf32>
    %41 = tpu.matmul %38, %40, %cst_23 {dimension_numbers = #tpu.dot_dimension_numbers<[1], [0], [0], [1], [0, 0, 1, 1], [], []>} : vector<16x128xbf16>, vector<128x384xbf16>, vector<16x384xf32> -> vector<16x384xf32>
    %42 = vector.broadcast %5 : vector<1x384xf32> to vector<16x384xf32>
    %43 = arith.addf %41, %42 : vector<16x384xf32>
    %c0_24 = arith.constant 0 : index
    %c0_25 = arith.constant 0 : index
    %44 = vector.load %arg3[%c0_24, %c0_25] : memref<8x8xf32, #tpu.memory_space<vmem>>, vector<8x8xf32>
    %45 = vector.shape_cast %44 : vector<8x8xf32> to vector<1x8x8xf32>
    %46 = vector.extract_strided_slice %43 {offsets = [0, 0], sizes = [8, 384], strides = [1, 1]} : vector<16x384xf32> to vector<8x384xf32>
    %47 = vector.extract_strided_slice %46 {offsets = [0, 0], sizes = [8, 128], strides = [1, 1]} : vector<8x384xf32> to vector<8x128xf32>
    %48 = vector.shape_cast %47 : vector<8x128xf32> to vector<8x2x64xf32>
    %49 = tpu.transpose %48, [1, 0, 2] : vector<8x2x64xf32> -> vector<2x8x64xf32>
    %50 = vector.extract_strided_slice %46 {offsets = [0, 128], sizes = [8, 128], strides = [1, 1]} : vector<8x384xf32> to vector<8x128xf32>
    %51 = vector.shape_cast %50 : vector<8x128xf32> to vector<8x2x64xf32>
    %52 = tpu.transpose %51, [1, 0, 2] : vector<8x2x64xf32> -> vector<2x8x64xf32>
    %53 = vector.extract_strided_slice %46 {offsets = [0, 256], sizes = [8, 128], strides = [1, 1]} : vector<8x384xf32> to vector<8x128xf32>
    %54 = vector.shape_cast %53 : vector<8x128xf32> to vector<8x2x64xf32>
    %55 = tpu.transpose %54, [1, 0, 2] : vector<8x2x64xf32> -> vector<2x8x64xf32>
    "tpu.trace_start"() <{level = 10 : i32, message = "hqd,hkd->hqk"}> : () -> ()
    %cst_26 = arith.constant dense<0.000000e+00> : vector<2x8x8xf32>
    %56 = tpu.matmul %49, %52, %cst_26 {dimension_numbers = #tpu.dot_dimension_numbers<[2], [2], [1], [1], [0, 0, 0, 1, 1, 1], [0], [0]>} : vector<2x8x64xf32>, vector<2x8x64xf32>, vector<2x8x8xf32> -> vector<2x8x8xf32>
    "tpu.trace_stop"() : () -> ()
    %57 = vector.broadcast %45 : vector<1x8x8xf32> to vector<2x8x8xf32>
    %58 = arith.addf %56, %57 : vector<2x8x8xf32>
    %cst_27 = arith.constant dense<0xFF800000> : vector<2x8xf32>
    %59 = vector.multi_reduction <maximumf>, %58, %cst_27 [2] : vector<2x8x8xf32> to vector<2x8xf32>
    %60 = vector.shape_cast %59 : vector<2x8xf32> to vector<2x8x1xf32>
    %61 = vector.broadcast %60 : vector<2x8x1xf32> to vector<2x8x8xf32>
    %62 = arith.subf %58, %61 : vector<2x8x8xf32>
    %63 = math.exp %62 : vector<2x8x8xf32>
    %cst_28 = arith.constant dense<0.000000e+00> : vector<2x8xf32>
    %64 = vector.multi_reduction <add>, %63, %cst_28 [2] : vector<2x8x8xf32> to vector<2x8xf32>
    %65 = vector.shape_cast %64 : vector<2x8xf32> to vector<2x8x1xf32>
    %66 = tpu.reciprocal %65 {approx = true} : vector<2x8x1xf32> -> vector<2x8x1xf32>
    %67 = vector.broadcast %66 : vector<2x8x1xf32> to vector<2x8x8xf32>
    %68 = arith.mulf %63, %67 : vector<2x8x8xf32>
    "tpu.trace_start"() <{level = 10 : i32, message = "hqk,hkd->hqd"}> : () -> ()
    %cst_29 = arith.constant dense<0.000000e+00> : vector<2x8x64xf32>
    %69 = tpu.matmul %68, %55, %cst_29 {dimension_numbers = #tpu.dot_dimension_numbers<[2], [1], [1], [2], [0, 0, 0, 1, 1, 2], [0], [0]>} : vector<2x8x8xf32>, vector<2x8x64xf32>, vector<2x8x64xf32> -> vector<2x8x64xf32>
    "tpu.trace_stop"() : () -> ()
    %70 = tpu.transpose %69, [1, 0, 2] : vector<2x8x64xf32> -> vector<8x2x64xf32>
    %71 = vector.shape_cast %70 : vector<8x2x64xf32> to vector<8x128xf32>
    %72 = vector.extract_strided_slice %43 {offsets = [8, 0], sizes = [8, 384], strides = [1, 1]} : vector<16x384xf32> to vector<8x384xf32>
    %73 = vector.extract_strided_slice %72 {offsets = [0, 0], sizes = [8, 128], strides = [1, 1]} : vector<8x384xf32> to vector<8x128xf32>
    %74 = vector.shape_cast %73 : vector<8x128xf32> to vector<8x2x64xf32>
    %75 = tpu.transpose %74, [1, 0, 2] : vector<8x2x64xf32> -> vector<2x8x64xf32>
    %76 = vector.extract_strided_slice %72 {offsets = [0, 128], sizes = [8, 128], strides = [1, 1]} : vector<8x384xf32> to vector<8x128xf32>
    %77 = vector.shape_cast %76 : vector<8x128xf32> to vector<8x2x64xf32>
    %78 = tpu.transpose %77, [1, 0, 2] : vector<8x2x64xf32> -> vector<2x8x64xf32>
    %79 = vector.extract_strided_slice %72 {offsets = [0, 256], sizes = [8, 128], strides = [1, 1]} : vector<8x384xf32> to vector<8x128xf32>
    %80 = vector.shape_cast %79 : vector<8x128xf32> to vector<8x2x64xf32>
    %81 = tpu.transpose %80, [1, 0, 2] : vector<8x2x64xf32> -> vector<2x8x64xf32>
    "tpu.trace_start"() <{level = 10 : i32, message = "hqd,hkd->hqk"}> : () -> ()
    %cst_30 = arith.constant dense<0.000000e+00> : vector<2x8x8xf32>
    %82 = tpu.matmul %75, %78, %cst_30 {dimension_numbers = #tpu.dot_dimension_numbers<[2], [2], [1], [1], [0, 0, 0, 1, 1, 1], [0], [0]>} : vector<2x8x64xf32>, vector<2x8x64xf32>, vector<2x8x8xf32> -> vector<2x8x8xf32>
    "tpu.trace_stop"() : () -> ()
    %83 = vector.broadcast %45 : vector<1x8x8xf32> to vector<2x8x8xf32>
    %84 = arith.addf %82, %83 : vector<2x8x8xf32>
    %cst_31 = arith.constant dense<0xFF800000> : vector<2x8xf32>
    %85 = vector.multi_reduction <maximumf>, %84, %cst_31 [2] : vector<2x8x8xf32> to vector<2x8xf32>
    %86 = vector.shape_cast %85 : vector<2x8xf32> to vector<2x8x1xf32>
    %87 = vector.broadcast %86 : vector<2x8x1xf32> to vector<2x8x8xf32>
    %88 = arith.subf %84, %87 : vector<2x8x8xf32>
    %89 = math.exp %88 : vector<2x8x8xf32>
    %cst_32 = arith.constant dense<0.000000e+00> : vector<2x8xf32>
    %90 = vector.multi_reduction <add>, %89, %cst_32 [2] : vector<2x8x8xf32> to vector<2x8xf32>
    %91 = vector.shape_cast %90 : vector<2x8xf32> to vector<2x8x1xf32>
    %92 = tpu.reciprocal %91 {approx = true} : vector<2x8x1xf32> -> vector<2x8x1xf32>
    %93 = vector.broadcast %92 : vector<2x8x1xf32> to vector<2x8x8xf32>
    %94 = arith.mulf %89, %93 : vector<2x8x8xf32>
    "tpu.trace_start"() <{level = 10 : i32, message = "hqk,hkd->hqd"}> : () -> ()
    %cst_33 = arith.constant dense<0.000000e+00> : vector<2x8x64xf32>
    %95 = tpu.matmul %94, %81, %cst_33 {dimension_numbers = #tpu.dot_dimension_numbers<[2], [1], [1], [2], [0, 0, 0, 1, 1, 2], [0], [0]>} : vector<2x8x8xf32>, vector<2x8x64xf32>, vector<2x8x64xf32> -> vector<2x8x64xf32>
    "tpu.trace_stop"() : () -> ()
    %96 = tpu.transpose %95, [1, 0, 2] : vector<2x8x64xf32> -> vector<8x2x64xf32>
    %97 = vector.shape_cast %96 : vector<8x2x64xf32> to vector<8x128xf32>
    %98 = tpu.concatenate %71, %97 in 0 : vector<8x128xf32>, vector<8x128xf32> -> vector<16x128xf32>
    %99 = arith.truncf %98 : vector<16x128xf32> to vector<16x128xbf16>
    %c0_34 = arith.constant 0 : index
    %c0_35 = arith.constant 0 : index
    %c384_36 = arith.constant 384 : index
    %100 = vector.load %arg4[%c0_34, %c0_35, %c384_36] : memref<1x128x512xbf16, #tpu.memory_space<vmem>>, vector<1x128x128xbf16>
    %101 = vector.shape_cast %100 : vector<1x128x128xbf16> to vector<128x128xbf16>
    %cst_37 = arith.constant dense<0.000000e+00> : vector<16x128xf32>
    %102 = tpu.matmul %99, %101, %cst_37 {dimension_numbers = #tpu.dot_dimension_numbers<[1], [0], [0], [1], [0, 0, 1, 1], [], []>} : vector<16x128xbf16>, vector<128x128xbf16>, vector<16x128xf32> -> vector<16x128xf32>
    %103 = vector.broadcast %7 : vector<1x128xf32> to vector<16x128xf32>
    %104 = arith.addf %102, %103 : vector<16x128xf32>
    %105 = arith.addf %3, %104 : vector<16x128xf32>
    %c0_38 = arith.constant 0 : index
    %c2 = arith.constant 2 : index
    %c0_39 = arith.constant 0 : index
    %106 = vector.load %arg7[%c0_38, %c2, %c0_39] : memref<1x4x128xf32, #tpu.memory_space<vmem>>, vector<1x1x128xf32>
    %107 = vector.shape_cast %106 : vector<1x1x128xf32> to vector<1x128xf32>
    %c0_40 = arith.constant 0 : index
    %c3 = arith.constant 3 : index
    %c0_41 = arith.constant 0 : index
    %108 = vector.load %arg7[%c0_40, %c3, %c0_41] : memref<1x4x128xf32, #tpu.memory_space<vmem>>, vector<1x1x128xf32>
    %109 = vector.shape_cast %108 : vector<1x1x128xf32> to vector<1x128xf32>
    %cst_42 = arith.constant dense<0.000000e+00> : vector<16xf32>
    %110 = vector.multi_reduction <add>, %105, %cst_42 [1] : vector<16x128xf32> to vector<16xf32>
    %111 = vector.shape_cast %110 : vector<16xf32> to vector<16x1xf32>
    %cst_43 = arith.constant 1.280000e+02 : f32
    %112 = vector.broadcast %cst_43 : f32 to vector<16x1xf32>
    %113 = arith.divf %111, %112 : vector<16x1xf32>
    %114 = vector.broadcast %113 : vector<16x1xf32> to vector<16x128xf32>
    %115 = arith.subf %105, %114 : vector<16x128xf32>
    %116 = arith.mulf %115, %115 : vector<16x128xf32>
    %cst_44 = arith.constant dense<0.000000e+00> : vector<16xf32>
    %117 = vector.multi_reduction <add>, %116, %cst_44 [1] : vector<16x128xf32> to vector<16xf32>
    %118 = vector.shape_cast %117 : vector<16xf32> to vector<16x1xf32>
    %cst_45 = arith.constant 1.280000e+02 : f32
    %119 = vector.broadcast %cst_45 : f32 to vector<16x1xf32>
    %120 = arith.divf %118, %119 : vector<16x1xf32>
    %121 = vector.broadcast %113 : vector<16x1xf32> to vector<16x128xf32>
    %122 = arith.subf %105, %121 : vector<16x128xf32>
    %cst_46 = arith.constant 9.99999974E-6 : f32
    %123 = vector.broadcast %cst_46 : f32 to vector<16x1xf32>
    %124 = arith.addf %120, %123 : vector<16x1xf32>
    %125 = math.rsqrt %124 : vector<16x1xf32>
    %126 = vector.broadcast %125 : vector<16x1xf32> to vector<16x128xf32>
    %127 = arith.mulf %122, %126 : vector<16x128xf32>
    %128 = vector.broadcast %107 : vector<1x128xf32> to vector<16x128xf32>
    %129 = arith.mulf %127, %128 : vector<16x128xf32>
    %130 = vector.broadcast %109 : vector<1x128xf32> to vector<16x128xf32>
    %131 = arith.addf %129, %130 : vector<16x128xf32>
    %132 = arith.truncf %131 : vector<16x128xf32> to vector<16x128xbf16>
    %c0_47 = arith.constant 0 : index
    %c0_48 = arith.constant 0 : index
    %c0_49 = arith.constant 0 : index
    %133 = vector.load %arg5[%c0_47, %c0_48, %c0_49] : memref<1x128x256xbf16, #tpu.memory_space<vmem>>, vector<1x128x256xbf16>
    %134 = vector.shape_cast %133 : vector<1x128x256xbf16> to vector<128x256xbf16>
    %cst_50 = arith.constant dense<0.000000e+00> : vector<16x256xf32>
    %135 = tpu.matmul %132, %134, %cst_50 {dimension_numbers = #tpu.dot_dimension_numbers<[1], [0], [0], [1], [0, 0, 1, 1], [], []>} : vector<16x128xbf16>, vector<128x256xbf16>, vector<16x256xf32> -> vector<16x256xf32>
    %136 = vector.broadcast %9 : vector<1x256xf32> to vector<16x256xf32>
    %137 = arith.addf %135, %136 : vector<16x256xf32>
    %cst_51 = arith.constant 1.702000e+00 : f32
    %138 = vector.broadcast %cst_51 : f32 to vector<16x256xf32>
    %139 = arith.mulf %138, %137 : vector<16x256xf32>
    %140 = arith.negf %139 : vector<16x256xf32>
    %141 = math.exp %140 : vector<16x256xf32>
    %cst_52 = arith.constant 1.000000e+00 : f32
    %142 = vector.broadcast %cst_52 : f32 to vector<16x256xf32>
    %143 = arith.addf %142, %141 : vector<16x256xf32>
    %144 = arith.divf %142, %143 : vector<16x256xf32>
    %145 = arith.mulf %137, %144 : vector<16x256xf32>
    %146 = arith.truncf %145 : vector<16x256xf32> to vector<16x256xbf16>
    %c0_53 = arith.constant 0 : index
    %c0_54 = arith.constant 0 : index
    %c0_55 = arith.constant 0 : index
    %147 = vector.load %arg6[%c0_53, %c0_54, %c0_55] : memref<1x256x128xbf16, #tpu.memory_space<vmem>>, vector<1x256x128xbf16>
    %148 = vector.shape_cast %147 : vector<1x256x128xbf16> to vector<256x128xbf16>
    %cst_56 = arith.constant dense<0.000000e+00> : vector<16x128xf32>
    %149 = tpu.matmul %146, %148, %cst_56 {dimension_numbers = #tpu.dot_dimension_numbers<[1], [0], [0], [1], [0, 0, 1, 1], [], []>} : vector<16x256xbf16>, vector<256x128xbf16>, vector<16x128xf32> -> vector<16x128xf32>
    %150 = vector.broadcast %11 : vector<1x128xf32> to vector<16x128xf32>
    %151 = arith.addf %149, %150 : vector<16x128xf32>
    %152 = arith.addf %105, %151 : vector<16x128xf32>
    %c0_57 = arith.constant 0 : index
    %c0_58 = arith.constant 0 : index
    %153 = vector.load %arg12[%c0_57, %c0_58] : memref<16x128xf32, #tpu.memory_space<vmem>>, vector<16x128xf32>
    tpu.vector_store %arg12[%c0_57, %c0_58], %152 {strides = array<i32>} : memref<16x128xf32, #tpu.memory_space<vmem>>, vector<16x128xf32>,
    %c2_i32 = arith.constant 2 : i32
    %154 = arith.cmpi eq, %arg0, %c2_i32 : i32
    %155 = arith.extui %154 : i1 to i32
    %c0_i32_59 = arith.constant 0 : i32
    %156 = arith.cmpi ne, %155, %c0_i32_59 : i32
    scf.if %156 {
      %c0_60 = arith.constant 0 : index
      %c0_61 = arith.constant 0 : index
      %157 = vector.load %arg10[%c0_60, %c0_61] : memref<16x128xf32, #tpu.memory_space<vmem>>, vector<16x128xf32>
      tpu.vector_store %arg10[%c0_60, %c0_61], %3 {strides = array<i32>} : memref<16x128xf32, #tpu.memory_space<vmem>>, vector<16x128xf32>,
      %c0_62 = arith.constant 0 : index
      %158 = memref.load %arg1[%c0_62] : memref<2xi32, #tpu.memory_space<smem>>
      %c0_i32_63 = arith.constant 0 : i32
      %159 = arith.addi %c0_i32_63, %158 : i32
      %160 = arith.index_cast %159 : i32 to index
      %c0_64 = arith.constant 0 : index
      %161 = vector.load %arg12[%160, %c0_64] : memref<16x128xf32, #tpu.memory_space<vmem>>, vector<1x128xf32>
      %c0_65 = arith.constant 0 : index
      %c0_66 = arith.constant 0 : index
      %162 = vector.load %arg9[%c0_65, %c0_66] : memref<2x128xf32, #tpu.memory_space<vmem>>, vector<1x128xf32>
      %c1_67 = arith.constant 1 : index
      %c0_68 = arith.constant 0 : index
      %163 = vector.load %arg9[%c1_67, %c0_68] : memref<2x128xf32, #tpu.memory_space<vmem>>, vector<1x128xf32>
      %cst_69 = arith.constant dense<0.000000e+00> : vector<1xf32>
      %164 = vector.multi_reduction <add>, %161, %cst_69 [1] : vector<1x128xf32> to vector<1xf32>
      %165 = vector.shape_cast %164 : vector<1xf32> to vector<1x1xf32>
      %cst_70 = arith.constant 1.280000e+02 : f32
      %166 = vector.broadcast %cst_70 : f32 to vector<1x1xf32>
      %167 = arith.divf %165, %166 : vector<1x1xf32>
      %168 = vector.broadcast %167 : vector<1x1xf32> to vector<1x128xf32>
      %169 = arith.subf %161, %168 : vector<1x128xf32>
      %170 = arith.mulf %169, %169 : vector<1x128xf32>
      %cst_71 = arith.constant dense<0.000000e+00> : vector<1xf32>
      %171 = vector.multi_reduction <add>, %170, %cst_71 [1] : vector<1x128xf32> to vector<1xf32>
      %172 = vector.shape_cast %171 : vector<1xf32> to vector<1x1xf32>
      %cst_72 = arith.constant 1.280000e+02 : f32
      %173 = vector.broadcast %cst_72 : f32 to vector<1x1xf32>
      %174 = arith.divf %172, %173 : vector<1x1xf32>
      %175 = vector.broadcast %167 : vector<1x1xf32> to vector<1x128xf32>
      %176 = arith.subf %161, %175 : vector<1x128xf32>
      %cst_73 = arith.constant 9.99999974E-6 : f32
      %177 = vector.broadcast %cst_73 : f32 to vector<1x1xf32>
      %178 = arith.addf %174, %177 : vector<1x1xf32>
      %179 = math.rsqrt %178 : vector<1x1xf32>
      %180 = vector.broadcast %179 : vector<1x1xf32> to vector<1x128xf32>
      %181 = arith.mulf %176, %180 : vector<1x128xf32>
      %182 = arith.mulf %181, %162 : vector<1x128xf32>
      %183 = arith.addf %182, %163 : vector<1x128xf32>
      %c0_74 = arith.constant 0 : index
      %c0_75 = arith.constant 0 : index
      %184 = vector.load %arg11[%c0_74, %c0_75] : memref<2x128xf32, #tpu.memory_space<vmem>>, vector<1x128xf32>
      tpu.vector_store %arg11[%c0_74, %c0_75], %183 {strides = array<i32>} : memref<2x128xf32, #tpu.memory_space<vmem>>, vector<1x128xf32>,
      %c1_76 = arith.constant 1 : index
      %185 = memref.load %arg1[%c1_76] : memref<2xi32, #tpu.memory_space<smem>>
      %c8_i32 = arith.constant 8 : i32
      %186 = arith.addi %c8_i32, %185 : i32
      %187 = arith.index_cast %186 : i32 to index
      %c0_77 = arith.constant 0 : index
      %188 = vector.load %arg12[%187, %c0_77] : memref<16x128xf32, #tpu.memory_space<vmem>>, vector<1x128xf32>
      %c0_78 = arith.constant 0 : index
      %c0_79 = arith.constant 0 : index
      %189 = vector.load %arg9[%c0_78, %c0_79] : memref<2x128xf32, #tpu.memory_space<vmem>>, vector<1x128xf32>
      %c1_80 = arith.constant 1 : index
      %c0_81 = arith.constant 0 : index
      %190 = vector.load %arg9[%c1_80, %c0_81] : memref<2x128xf32, #tpu.memory_space<vmem>>, vector<1x128xf32>
      %cst_82 = arith.constant dense<0.000000e+00> : vector<1xf32>
      %191 = vector.multi_reduction <add>, %188, %cst_82 [1] : vector<1x128xf32> to vector<1xf32>
      %192 = vector.shape_cast %191 : vector<1xf32> to vector<1x1xf32>
      %cst_83 = arith.constant 1.280000e+02 : f32
      %193 = vector.broadcast %cst_83 : f32 to vector<1x1xf32>
      %194 = arith.divf %192, %193 : vector<1x1xf32>
      %195 = vector.broadcast %194 : vector<1x1xf32> to vector<1x128xf32>
      %196 = arith.subf %188, %195 : vector<1x128xf32>
      %197 = arith.mulf %196, %196 : vector<1x128xf32>
      %cst_84 = arith.constant dense<0.000000e+00> : vector<1xf32>
      %198 = vector.multi_reduction <add>, %197, %cst_84 [1] : vector<1x128xf32> to vector<1xf32>
      %199 = vector.shape_cast %198 : vector<1xf32> to vector<1x1xf32>
      %cst_85 = arith.constant 1.280000e+02 : f32
      %200 = vector.broadcast %cst_85 : f32 to vector<1x1xf32>
      %201 = arith.divf %199, %200 : vector<1x1xf32>
      %202 = vector.broadcast %194 : vector<1x1xf32> to vector<1x128xf32>
      %203 = arith.subf %188, %202 : vector<1x128xf32>
      %cst_86 = arith.constant 9.99999974E-6 : f32
      %204 = vector.broadcast %cst_86 : f32 to vector<1x1xf32>
      %205 = arith.addf %201, %204 : vector<1x1xf32>
      %206 = math.rsqrt %205 : vector<1x1xf32>
      %207 = vector.broadcast %206 : vector<1x1xf32> to vector<1x128xf32>
      %208 = arith.mulf %203, %207 : vector<1x128xf32>
      %209 = arith.mulf %208, %189 : vector<1x128xf32>
      %210 = arith.addf %209, %190 : vector<1x128xf32>
      %c1_87 = arith.constant 1 : index
      %c0_88 = arith.constant 0 : index
      %211 = vector.load %arg11[%c1_87, %c0_88] : memref<2x128xf32, #tpu.memory_space<vmem>>, vector<1x128xf32>
      tpu.vector_store %arg11[%c1_87, %c0_88], %210 {strides = array<i32>} : memref<2x128xf32, #tpu.memory_space<vmem>>, vector<1x128xf32>,
    } else {
    }
    return
  }
  func.func @transform_0(%arg0: i32, %arg1: memref<2xi32, #tpu.memory_space<smem>>) -> (i32, i32) {
    %c0_i32 = arith.constant 0 : i32
    %c0_i32_0 = arith.constant 0 : i32
    %c0_i32_1 = arith.constant 0 : i32
    return %c0_i32, %c0_i32_0 : i32, i32
  }
  func.func @transform_1(%arg0: i32, %arg1: memref<2xi32, #tpu.memory_space<smem>>) -> (i32, i32) {
    %c0_i32 = arith.constant 0 : i32
    %c0_i32_0 = arith.constant 0 : i32
    %c0_i32_1 = arith.constant 0 : i32
    return %c0_i32, %c0_i32_0 : i32, i32
  }
  func.func @transform_2(%arg0: i32, %arg1: memref<2xi32, #tpu.memory_space<smem>>) -> (i32, i32, i32) {
    %c0_i32 = arith.constant 0 : i32
    %c0_i32_0 = arith.constant 0 : i32
    %c0_i32_1 = arith.constant 0 : i32
    return %arg0, %c0_i32, %c0_i32_0 : i32, i32, i32
  }
  func.func @transform_3(%arg0: i32, %arg1: memref<2xi32, #tpu.memory_space<smem>>) -> (i32, i32, i32) {
    %c0_i32 = arith.constant 0 : i32
    %c0_i32_0 = arith.constant 0 : i32
    %c0_i32_1 = arith.constant 0 : i32
    return %arg0, %c0_i32, %c0_i32_0 : i32, i32, i32
  }
  func.func @transform_4(%arg0: i32, %arg1: memref<2xi32, #tpu.memory_space<smem>>) -> (i32, i32, i32) {
    %c0_i32 = arith.constant 0 : i32
    %c0_i32_0 = arith.constant 0 : i32
    %c0_i32_1 = arith.constant 0 : i32
    return %arg0, %c0_i32, %c0_i32_0 : i32, i32, i32
  }
  func.func @transform_5(%arg0: i32, %arg1: memref<2xi32, #tpu.memory_space<smem>>) -> (i32, i32, i32) {
    %c0_i32 = arith.constant 0 : i32
    %c0_i32_0 = arith.constant 0 : i32
    %c0_i32_1 = arith.constant 0 : i32
    return %arg0, %c0_i32, %c0_i32_0 : i32, i32, i32
  }
  func.func @transform_6(%arg0: i32, %arg1: memref<2xi32, #tpu.memory_space<smem>>) -> (i32, i32, i32) {
    %c0_i32 = arith.constant 0 : i32
    %c0_i32_0 = arith.constant 0 : i32
    %c0_i32_1 = arith.constant 0 : i32
    return %arg0, %c0_i32, %c0_i32_0 : i32, i32, i32
  }
  func.func @transform_7(%arg0: i32, %arg1: memref<2xi32, #tpu.memory_space<smem>>) -> (i32, i32) {
    %c0_i32 = arith.constant 0 : i32
    %c0_i32_0 = arith.constant 0 : i32
    %c0_i32_1 = arith.constant 0 : i32
    return %c0_i32, %c0_i32_0 : i32, i32
  }
  func.func @transform_8(%arg0: i32, %arg1: memref<2xi32, #tpu.memory_space<smem>>) -> (i32, i32) {
    %c0_i32 = arith.constant 0 : i32
    %c0_i32_0 = arith.constant 0 : i32
    %c0_i32_1 = arith.constant 0 : i32
    return %c0_i32, %c0_i32_0 : i32, i32
  }
  func.func @transform_9(%arg0: i32, %arg1: memref<2xi32, #tpu.memory_space<smem>>) -> (i32, i32) {
    %c0_i32 = arith.constant 0 : i32
    %c0_i32_0 = arith.constant 0 : i32
    %c0_i32_1 = arith.constant 0 : i32
    return %c0_i32, %c0_i32_0 : i32, i32
  }
}

</mosaic_0001>

<bundles_post_ra>
// kernel: tpu_custom_call.1
= control target key start
LH: loop header
LB: loop body
LE: loop exit
PB: predicated region body
PF: predicated region fallthrough
CT: control target
= control target key end

     0   :  { %s3996_s13 = smov [#allocation4]   ;;  %s4769_s0 = inlined_call_operand.hbm [shape: s32[2], index: 0, kind: input, shape index: {}]   ;;  %s4770_s1 = inlined_call_operand.hbm [shape: f32[16,128], index: 1, kind: input, shape index: {}]   ;;  %s4771_s2 = inlined_call_operand.hbm [shape: f32[8,8], index: 2, kind: input, shape index: {}]   ;;  %s4772_s3 = inlined_call_operand.hbm [shape: bf16[3,128,512], index: 3, kind: input, shape index: {}]   ;;  %s4773_s4 = inlined_call_operand.hbm [shape: bf16[3,128,256], index: 4, kind: input, shape index: {}]   ;;  %s4774_s5 = inlined_call_operand.hbm [shape: bf16[3,256,128], index: 5, kind: input, shape index: {}]   ;;  %s4775_s6 = inlined_call_operand.hbm [shape: f32[3,4,128], index: 6, kind: input, shape index: {}]   ;;  %s4776_s7 = inlined_call_operand.hbm [shape: f32[3,1,896], index: 7, kind: input, shape index: {}]   ;;  %s4777_s8 = inlined_call_operand.vmem [shape: f32[2,128], index: 8, kind: input, shape index: {}]   ;;  %s4778_s9 = inlined_call_operand.hbm [shape: f32[16,128], index: 9, kind: output, shape index: {0}]   ;;  %s4779_s10 = inlined_call_operand.hbm [shape: f32[2,128], index: 10, kind: output, shape index: {1}]  }
   0x1   :  { %4791 = sst [smem:[#allocation27_spill]] %s4770_s1 }
   0x2   :  { %4792 = sst [smem:[#allocation28_spill]] %s4778_s9 }
   0x3   :  { %4793 = sst [smem:[#allocation29_spill]] %s4779_s10 }
   0x4   :  { %17 = dma.hbm_to_smem %s4769_s0, 16, %s3996_s13, [#allocation3] }
   0x5   :  { %3958 = dma.done.wait [#allocation3], 16 }
   0x6   :  { %3959 = vsyncadd [#allocation3], 4294967280 }
   0x7   :  { %19 = sfence }
   0x8   :  { %20 = vsyncpa [#allocation6], 0 }
   0x9   :  { %21 = vsyncpa [#allocation9], 0 }
   0xa   :  { %22 = vsyncpa [#allocation7], 0 }
   0xb   :  { %23 = vsyncpa [#allocation17], 0  ;;  %s4078_s16 = smov 0   ;;  %s4080_s17 = smov 0  }
   0xc   :  { %s4082_s18 = smov 0   ;;  %s4084_s19 = smov 0  }
   0xd LB: > { %4794 = sst [smem:[#allocation24_spill]] %s3990_s18  ;;  %s4097_s0 = sadd.s32 4294967295, %s3994_s19   ;;  %s3994_s19 = sphi %s4084_s19, %s4817_s19   ;;  %s3990_s18 = sphi %s4082_s18, %s4819_s18   ;;  %s3986_s17 = sphi %s4080_s17, %s4821_s17   ;;  %s3982_s16 = sphi %s4078_s16, %s4820_s16  }
   0xe   : > { %s4100_s20 = sadd.s32 1, %s3994_s19   ;;  %s78_s22 = sadd.s32 1, %s3990_s18 }
   0xf   : > { %4795 = sst [smem:[#allocation25_spill]] %s4100_s20  ;;  %s75_s21 = ssub.s32 %s3994_s19, %s4100_s20 }
  0x10   : > { %p76_p0 = scmp.eq.s32.totalorder %s75_s21, 0  ;;  %p85_p1 = scmp.ne.s32.totalorder %s3990_s18, %s3986_s17 }
  0x11   : > { %p86_p2 = scmp.eq.s32.totalorder %s3994_s19, 0  ;;  %p91_p3 = scmp.ne.s32.totalorder %s3986_s17, %s3982_s16 }
  0x12   : > { %s4110_s23 = scalar_select %p76_p0, %s3990_s18, %s78_s22  }
  0x13   : > { %p4112_p4 = por %p86_p2, %p85_p1  ;;  %p4780_p5 = scmp.eq.s32.totalorder %s4097_s0, 0 }
  0x14   : > { %4796 = sst [smem:[#allocation26_spill]] %s4110_s23  ;;  %p3177_p6 = scmp.ge.s32.totalorder %s3994_s19, 1 }
  0x15   : > { %p269_p7 = scmp.lt.s32.totalorder %s3994_s19, 4  ;;  %p4121_p8 = por %p4780_p5, %p91_p3 }
  0x16   : > { %s3997_s27 = smov [#allocation5]   ;;  %p3505_p13 = scmp.lt.s32.totalorder %s3994_s19, 3 }
  0x17   : > { %s4798_s25 = scalar_select %p4121_p8, 1, 0 }
  0x18   : > { %p4126_p10 = pnand %p3177_p6, %p269_p7  ;;  %s281_s28 = sshll.u32 %s3997_s27, 4  ;;  %s282_s28 = int_to_ptr.vmem [resolvable:$true] %s281_s28 }
  0x19   : > { %s309_s30 = sand.u32 1, %s3994_s19   ;;  %s4141_s11 = sand.u32 1, %s3990_s18  }
  0x1a   : > { %s4799_s26 = scalar_select %p4126_p10, 1, 0 }
  0x1b   : > { %p3480_p11 = pneg %p4126_p10  ;;  %p4145_p0 = pnand %p3505_p13, %p4112_p4 }
  0x1c   : > { %s3713_s13 = scalar_lea.vmem %s282_s28, 256  ;;  %p3721_p7 = scmp.lt.s32.totalorder %s282_s28, %s282_s28 }
  0x1d   : > { %p4134_p12 = pnand %p3480_p11, %p4780_p5  ;;  %p3714_p2 = scmp.ne.s32.totalorder %s282_s28, %s3713_s13 }
  0x1e   : > { %p3722_p11 = scmp.lt.s32.totalorder %s3713_s13, %s3713_s13 }
  0x1f   : > { %s4800_s29 = scalar_select %p4134_p12, 1, 0 }
  0x20   : > { %p4784_p1 = pneg %p4134_p12  ;;  %p3723_p9 = por %p3722_p11, %p3721_p7 }
  0x22   : > { %p3716_p3 = pnand %p3714_p2, %p4784_p1 }
  0x24   : > { %p3717_p6 = pneg %p3716_p3 }
  0x26   : > { %p3724_p5 = pnand %p3723_p9, %p3717_p6 }
  0x28   : > { %3727 = shalt.err (!%p3724_p5)
}
  0x29   : > { %s4789_s14 = smov 128   ;;  %s4790_s15 = smov 8  }
  0x2a   : > { %s4802_s1 = sld [smem:[#allocation27_spill]]  ;;  %s3181_s22 = sshll.u32 %s4141_s11, 8 }
  0x2b   : > { %s3312_s24 = sshll.u32 %s3994_s19, 12  ;;  %s313_s18 = scalar_lea.vmem [#allocation10], %s3181_s22 }
  0x2c   : > { %s4167_s23 = scalar_lea.hbm %s4772_s3, %s3312_s24  ;;  %s320_s20 = sshll.u32 %s313_s18, 4  ;;  %s4169_s20 = int_to_ptr.vmem [resolvable:$true] %s320_s20 }
  0x2d   : > { %s4171_s10 = scalar_lea.sflag [#allocation6], %s309_s30  ;;  %s3728_s9 = scalar_lea.hbm %s4167_s23, 4096 }
  0x2e   : > { %p3729_p4 = scmp.ne.s32.totalorder %s4167_s23, %s3728_s9  ;;  %p4177_p5 = pneg %p4145_p0 }
  0x2f   : > { %s3733_s22 = scalar_lea.hbm %s4772_s3, 12288  ;;  %p3734_p2 = scmp.lt.s32.totalorder %s4167_s23, %s4772_s3 }
  0x30   : > { %3483 = dma.hbm_to_vmem [thread:$0]  (!%p4134_p12), %s4802_s1, 256, %s282_s28, [#allocation6], %s4789_s14, %s4789_s14, %s4790_s15  }
  0x31   : > { %p3731_p9 = pnand %p4177_p5, %p3729_p4  ;;  %p3735_p3 = scmp.lt.s32.totalorder %s3733_s22, %s3728_s9 }
  0x33   : > { %p3732_p13 = pneg %p3731_p9  ;;  %p3736_p6 = por %p3735_p3, %p3734_p2 }
  0x35   : > { %p3737_p7 = pnand %p3736_p6, %p3732_p13 }
  0x37   : > { %3740 = shalt.err (!%p3737_p7)
}
  0x38   : > { %s3741_s30 = scalar_lea.vmem %s4169_s20, 4096  ;;  %s4000_s27 = smov [#allocation10]  }
  0x39   : > { %p3742_p11 = scmp.ne.s32.totalorder %s4169_s20, %s3741_s30  ;;  %s3746_s13 = sshll.u32 %s4000_s27, 4  ;;  %s3747_s13 = int_to_ptr.vmem [resolvable:$false] %s3746_s13 }
  0x3a   : > { %s3748_s16 = scalar_lea.vmem %s3747_s13, 8192  ;;  %p3749_p1 = scmp.lt.s32.totalorder %s4169_s20, %s3747_s13 }
  0x3b   : > { %p3744_p4 = pnand %p3742_p11, %p4177_p5  ;;  %p3750_p8 = scmp.lt.s32.totalorder %s3748_s16, %s3741_s30 }
  0x3d   : > { %p3745_p9 = pneg %p3744_p4  ;;  %p3751_p10 = por %p3750_p8, %p3749_p1 }
  0x3f   : > { %p3752_p12 = pnand %p3751_p10, %p3745_p9 }
  0x41   : > { %3755 = shalt.err (!%p3752_p12)
}
  0x42   : > { %s4001_s9 = smov 256   ;;  %s4002_s21 = smov 16  }
  0x43   : > { %3490 = dma.hbm_to_vmem [thread:$0]  (!%p4145_p0), %s4167_s23, 4096, %s4169_s20, %s4171_s10, %s4001_s9, %s4001_s9, %s4002_s21  }
  0x44   : > { %s3184_s22 = sshll.u32 %s4141_s11, 7  ;;  %s3313_s18 = sshll.u32 %s3994_s19, 11 }
  0x45   : > { %s4205_s30 = scalar_lea.hbm %s4773_s4, %s3313_s18  ;;  %s334_s13 = scalar_lea.vmem [#allocation11], %s3184_s22 }
  0x46   : > { %s341_s16 = sshll.u32 %s334_s13, 4  ;;  %s4214_s1 = scalar_lea.hbm %s4774_s5, %s3313_s18  ;;  %s4209_s16 = int_to_ptr.vmem [resolvable:$true] %s341_s16 }
  0x47   : > { %s3756_s20 = scalar_lea.hbm %s4205_s30, 2048  ;;  %s3761_s21 = scalar_lea.hbm %s4773_s4, 6144 }
  0x48   : > { %p3757_p8 = scmp.ne.s32.totalorder %s4205_s30, %s3756_s20  ;;  %p3762_p1 = scmp.lt.s32.totalorder %s4205_s30, %s4773_s4 }
  0x49   : > { %p3763_p13 = scmp.lt.s32.totalorder %s3761_s21, %s3756_s20 }
  0x4a   : > { %p3759_p10 = pnand %p3757_p8, %p4177_p5 }
  0x4b   : > { %p3764_p2 = por %p3763_p13, %p3762_p1 }
  0x4c   : > { %p3760_p12 = pneg %p3759_p10 }
  0x4e   : > { %p3765_p3 = pnand %p3764_p2, %p3760_p12 }
  0x50   : > { %3768 = shalt.err (!%p3765_p3)
}
  0x51   : > { %s3769_s14 = scalar_lea.vmem %s4209_s16, 2048  ;;  %s4003_s15 = smov [#allocation11]  }
  0x52   : > { %p3770_p6 = scmp.ne.s32.totalorder %s4209_s16, %s3769_s14  ;;  %s3774_s18 = sshll.u32 %s4003_s15, 4  ;;  %s3775_s18 = int_to_ptr.vmem [resolvable:$false] %s3774_s18 }
  0x53   : > { %s3776_s13 = scalar_lea.vmem %s3775_s18, 4096  ;;  %p3777_p4 = scmp.lt.s32.totalorder %s4209_s16, %s3775_s18 }
  0x54   : > { %p3772_p7 = pnand %p3770_p6, %p4177_p5  ;;  %p3778_p9 = scmp.lt.s32.totalorder %s3776_s13, %s3769_s14 }
  0x56   : > { %p3773_p11 = pneg %p3772_p7  ;;  %p3779_p8 = por %p3778_p9, %p3777_p4 }
  0x58   : > { %p3780_p10 = pnand %p3779_p8, %p3773_p11 }
  0x5a   : > { %3783 = shalt.err (!%p3780_p10)
}
  0x5b   : > { %s4804_s20 = smov 8   ;;  %s4805_s23 = smov 128  }
  0x5c   : > { %3493 = dma.hbm_to_vmem [thread:$0]  (!%p4145_p0), %s4205_s30, 2048, %s4209_s16, %s4171_s10, %s4805_s23, %s4805_s23, %s4804_s20  }
  0x5d   : > { %s355_s9 = scalar_lea.vmem [#allocation12], %s3184_s22  ;;  %s3784_s24 = scalar_lea.hbm %s4214_s1, 2048 }
  0x5e   : > { %s362_s21 = sshll.u32 %s355_s9, 4  ;;  %p3785_p12 = scmp.ne.s32.totalorder %s4214_s1, %s3784_s24  ;;  %s4242_s21 = int_to_ptr.vmem [resolvable:$true] %s362_s21 }
  0x5f   : > { %s3789_s15 = scalar_lea.hbm %s4774_s5, 6144  ;;  %p3790_p2 = scmp.lt.s32.totalorder %s4214_s1, %s4774_s5 }
  0x60   : > { %p3787_p1 = pnand %p3785_p12, %p4177_p5  ;;  %p3791_p3 = scmp.lt.s32.totalorder %s3789_s15, %s3784_s24 }
  0x62   : > { %p3788_p13 = pneg %p3787_p1  ;;  %p3792_p6 = por %p3791_p3, %p3790_p2 }
  0x64   : > { %p3793_p7 = pnand %p3792_p6, %p3788_p13 }
  0x66   : > { %3796 = shalt.err (!%p3793_p7)
}
  0x67   : > { %s3797_s22 = scalar_lea.vmem %s4242_s21, 2048  ;;  %s4004_s30 = smov [#allocation12]  }
  0x68   : > { %p3798_p11 = scmp.ne.s32.totalorder %s4242_s21, %s3797_s22  ;;  %s3802_s16 = sshll.u32 %s4004_s30, 4  ;;  %s3803_s16 = int_to_ptr.vmem [resolvable:$false] %s3802_s16 }
  0x69   : > { %s3804_s20 = scalar_lea.vmem %s3803_s16, 4096  ;;  %p3805_p8 = scmp.lt.s32.totalorder %s4242_s21, %s3803_s16 }
  0x6a   : > { %p3800_p4 = pnand %p3798_p11, %p4177_p5  ;;  %p3806_p10 = scmp.lt.s32.totalorder %s3804_s20, %s3797_s22 }
  0x6c   : > { %p3801_p9 = pneg %p3800_p4  ;;  %p3807_p12 = por %p3806_p10, %p3805_p8 }
  0x6e   : > { %p3808_p1 = pnand %p3807_p12, %p3801_p9 }
  0x70   : > { %3811 = shalt.err (!%p3808_p1)
}
  0x71   : > { %s4005_s23 = smov 64   ;;  %s4006_s9 = smov 4  }
  0x72   : > { %3496 = dma.hbm_to_vmem [thread:$0]  (!%p4145_p0), %s4214_s1, 2048, %s4242_s21, %s4171_s10, %s4005_s23, %s4005_s23, %s4006_s9  }
  0x73   : > { %s3190_s24 = sshll.u32 %s4141_s11, 2  ;;  %s3191_s27 = sshll.u32 %s3994_s19, 6 }
  0x74   : > { %s4270_s18 = scalar_lea.hbm %s4775_s6, %s3191_s27  ;;  %s376_s13 = scalar_lea.vmem [#allocation13], %s3190_s24 }
  0x75   : > { %s383_s22 = sshll.u32 %s376_s13, 4  ;;  %s4007_s30 = smov [#allocation8]   ;;  %s384_s22 = int_to_ptr.vmem [resolvable:$true] %s383_s22 }
  0x76   : > { %s295_s16 = sshll.u32 %s4007_s30, 4  ;;  %s3812_s20 = scalar_lea.hbm %s4270_s18, 64  ;;  %s296_s16 = int_to_ptr.vmem [resolvable:$true] %s295_s16 }
  0x77   : > { %p3813_p13 = scmp.ne.s32.totalorder %s4270_s18, %s3812_s20  ;;  %s3817_s23 = scalar_lea.hbm %s4775_s6, 192 }
  0x78   : > { %p3818_p6 = scmp.lt.s32.totalorder %s4270_s18, %s4775_s6  ;;  %p3819_p7 = scmp.lt.s32.totalorder %s3817_s23, %s3812_s20 }
  0x79   : > { %p3815_p2 = pnand %p3813_p13, %p4177_p5 }
  0x7a   : > { %p3820_p11 = por %p3819_p7, %p3818_p6 }
  0x7b   : > { %p3816_p3 = pneg %p3815_p2 }
  0x7d   : > { %p3821_p4 = pnand %p3820_p11, %p3816_p3 }
  0x7f   : > { %3824 = shalt.err (!%p3821_p4)
}
  0x80   : > { %s3825_s24 = scalar_lea.vmem %s384_s22, 64  ;;  %s4008_s14 = smov [#allocation13]  }
  0x81   : > { %p3826_p9 = scmp.ne.s32.totalorder %s384_s22, %s3825_s24  ;;  %s3830_s15 = sshll.u32 %s4008_s14, 4  ;;  %s3831_s15 = int_to_ptr.vmem [resolvable:$false] %s3830_s15 }
  0x82   : > { %s3832_s13 = scalar_lea.vmem %s3831_s15, 128  ;;  %p3833_p12 = scmp.lt.s32.totalorder %s384_s22, %s3831_s15 }
  0x83   : > { %p3828_p8 = pnand %p3826_p9, %p4177_p5  ;;  %p3834_p1 = scmp.lt.s32.totalorder %s3832_s13, %s3825_s24 }
  0x85   : > { %p3829_p10 = pneg %p3828_p8  ;;  %p3835_p13 = por %p3834_p1, %p3833_p12 }
  0x87   : > { %p3836_p2 = pnand %p3835_p13, %p3829_p10 }
  0x89   : > { %3839 = shalt.err (!%p3836_p2)
}
  0x8a   : > { %3499 = dma.hbm_to_vmem [thread:$0]  (!%p4145_p0), %s4270_s18, 64, %s384_s22, %s4171_s10  }
  0x8b   : > { %s3451_s30 = smul.u32 7, %s4141_s11  ;;  %s3851_s20 = scalar_lea.vmem %s296_s16, 128 }
  0x8c   : > { %p3852_p3 = scmp.ne.s32.totalorder %s296_s16, %s3851_s20  ;;  %p4806_p6 = scmp.ne.s32.totalorder %s4800_s29, 0 }
  0x8d   : > { %p3859_p9 = scmp.lt.s32.totalorder %s296_s16, %s296_s16  ;;  %p3860_p8 = scmp.lt.s32.totalorder %s3851_s20, %s3851_s20 }
  0x8e   : > { %p4807_p7 = pneg %p4806_p6 }
  0x8f   : > { %p3861_p12 = por %p3860_p8, %p3859_p9 }
  0x90   : > { %p3854_p11 = pnand %p3852_p3, %p4807_p7 }
  0x92   : > { %p3855_p4 = pneg %p3854_p11 }
  0x94   : > { %p3862_p10 = pnand %p3861_p12, %p3855_p4 }
  0x96   : > { %3865 = shalt.err (!%p3862_p10)
}
  0x97   : > { %3486 = dma.hbm_to_vmem [thread:$0]  (!%p4806_p6), %s4771_s2, 128, %s296_s16, [#allocation9]  }
  0x98   : > { %s3452_s11 = smul.u32 112, %s3994_s19  ;;  %s394_s18 = scalar_lea.vmem [#allocation14], %s3451_s30 }
  0x99   : > { %s402_s22 = sshll.u32 %s394_s18, 4  ;;  %s3871_s15 = scalar_lea.hbm %s4776_s7, 336  ;;  %s403_s22 = int_to_ptr.vmem [resolvable:$true] %s402_s22 }
  0x9a   : > { %s400_s27 = scalar_lea.hbm %s4776_s7, %s3452_s11 }
  0x9b   : > { %s3866_s24 = scalar_lea.hbm %s400_s27, 112  ;;  %p3872_p3 = scmp.lt.s32.totalorder %s400_s27, %s4776_s7 }
  0x9c   : > { %p3867_p1 = scmp.ne.s32.totalorder %s400_s27, %s3866_s24  ;;  %p3873_p6 = scmp.lt.s32.totalorder %s3871_s15, %s3866_s24 }
  0x9e   : > { %p3869_p13 = pnand %p3867_p1, %p4177_p5  ;;  %p3874_p7 = por %p3873_p6, %p3872_p3 }
  0xa0   : > { %p3870_p2 = pneg %p3869_p13 }
  0xa2   : > { %p3875_p11 = pnand %p3874_p7, %p3870_p2 }
  0xa4   : > { %3878 = shalt.err (!%p3875_p11)
}
  0xa5   : > { %s3879_s19 = scalar_lea.vmem %s403_s22, 112  ;;  %s4009_s16 = smov [#allocation14]  }
  0xa6   : > { %p3880_p4 = scmp.ne.s32.totalorder %s403_s22, %s3879_s19  ;;  %s3884_s30 = sshll.u32 %s4009_s16, 4  ;;  %s3885_s30 = int_to_ptr.vmem [resolvable:$false] %s3884_s30 }
  0xa7   : > { %s3886_s1 = scalar_lea.vmem %s3885_s30, 224  ;;  %p3887_p12 = scmp.lt.s32.totalorder %s403_s22, %s3885_s30 }
  0xa8   : > { %p3882_p9 = pnand %p3880_p4, %p4177_p5  ;;  %p3888_p10 = scmp.lt.s32.totalorder %s3886_s1, %s3879_s19 }
  0xaa   : > { %p3883_p8 = pneg %p3882_p9  ;;  %p3889_p1 = por %p3888_p10, %p3887_p12 }
  0xac   : > { %p3890_p13 = pnand %p3889_p1, %p3883_p8 }
  0xae   : > { %3893 = shalt.err (!%p3890_p13)
}
  0xaf   : > { %3502 = dma.hbm_to_vmem [thread:$0]  (!%p4145_p0), %s400_s27, 112, %s403_s22, %s4171_s10  }
  0xb0   : > { %p4808_p2 = scmp.ne.s32.totalorder %s4799_s26, 0 }
  0xb1   : > { %p4809_p3 = scmp.eq.s32.totalorder (!%p4808_p2), %s4097_s0, 0 }
  0xb2   : > { %411 = sbr.rel (%p4808_p2) target bundleno = 3536 (0xdd0), region = 52 }
  0xb7   : > { %3961 = dma.done.wait (%p4809_p3), [#allocation6], 256   ;;  %p4810_p5 = pmov %p4809_p3 }
  0xb8   : > { %p4811_p6 = pmov %p4809_p3 }
  0xb9   : > { %3963 = vsyncadd (%p4810_p5), [#allocation6], 4294967040 }
  0xba   : > { %3965 = dma.done.wait (%p4811_p6), [#allocation9], 128   ;;  %p4812_p7 = pmov %p4809_p3 }
  0xbb   : > { %s421_s12 = sand.u32 1, %s4097_s0   ;;  %s423_s10 = sand.u32 1, %s3986_s17  }
  0xbc   : > { %3967 = vsyncadd (%p4812_p7), [#allocation9], 4294967168  ;;  %s3196_s28 = sshll.u32 %s423_s10, 8  ;;  %s422_s26 = scalar_lea.sflag [#allocation6], %s421_s12 }
  0xbd   : > { %s4327_s21 = scalar_lea.vmem [#allocation10], %s3196_s28  ;;  %p4813_p0 = scmp.ne.s32.totalorder %s4798_s25, 0 }
  0xbf   : > { %3969 = dma.done.wait (%p4813_p0), %s422_s26, 8368  }
  0xc0   : > { %3971 = vsyncadd (%p4813_p0), %s422_s26, 4294958928  ;;  %s3197_s11 = sshll.u32 %s423_s10, 7  ;;  %s3199_s18 = sshll.u32 %s423_s10, 2 }
  0xc1   : > { %s3453_s22 = smul.u32 7, %s423_s10  ;;  %s4333_s23 = scalar_lea.vmem [#allocation11], %s3197_s11 }
  0xc2   : > { %s4335_s9 = scalar_lea.vmem [#allocation12], %s3197_s11  ;;  %s4337_s27 = scalar_lea.vmem [#allocation13], %s3199_s18 }
  0xc3   : > { %s4339_s24 = scalar_lea.vmem [#allocation14], %s3453_s22  ;;  %p4814_p11 = scmp.ne.s32.totalorder %s4097_s0, 0 }
  0xc5   : > { %515 = sbr.rel (%p4814_p11) target bundleno = 204 (0xcc), region = 84 }
  0xca   : > { %v516_v0 = vld [vmem:[#allocation5] sm:$0xff]  ;;  %v517_v1 = vld [vmem:[#allocation5 + $0x8] sm:$0xff] }
  0xcb   : > { %518 = vst [vmem:[#allocation2] sm:$0xff] %v516_v0  ;;  %519 = vst [vmem:[#allocation2 + $0x8] sm:$0xff] %v517_v1 }
  0xcc PF: > { %v3568_v4 = vld [vmem:[%s4327_s21 + $0xe4] ss:$16 sps:$4 sm:$0xff]   ;;  %v3570_v5 = vld [vmem:[%s4327_s21 + $0xe0] ss:$16 sps:$4 sm:$0xff]   ;;  %v4010_v6 = vmov 0.0   ;;  %v4011_v29 = vmov 0   ;;  %v597_v55 = vlaneseq }
  0xcd   : > { %3371 = vmatprep.subr.bf16.mxu1 %v4010_v6  ;;  %v3571_v7 = vld [vmem:[%s4327_s21 + $0xe8] ss:$16 sps:$4 sm:$0xff]   ;;  %740 = vmatprep.subr.bf16.mxu0 %v3568_v4  ;;  %v3572_v16 = vld [vmem:[%s4327_s21 + $0xc4] ss:$16 sps:$4 sm:$0xff]   ;;  %v3574_v17 = vld [vmem:[%s4327_s21 + $0xc0] ss:$16 sps:$4 sm:$0xff]  }
  0xce   : > { %741 = vmatpush1.bf16.msra.mxu0 %v3570_v5  ;;  %3372 = vmatpush3.bf16.msra.mxu1 %v3571_v7  ;;  %v3575_v18 = vld [vmem:[%s4327_s21 + $0xc8] ss:$16 sps:$4 sm:$0xff]   ;;  %v3576_v19 = vld [vmem:[%s4327_s21 + $0xa4] ss:$16 sps:$4 sm:$0xff]   ;;  %v3578_v20 = vld [vmem:[%s4327_s21 + $0xa0] ss:$16 sps:$4 sm:$0xff]  }
  0xcf   : > { %3373 = vmatprep.subr.bf16.mxu1 %v4010_v6  ;;  %742 = vmatprep.subr.bf16.mxu0 %v3572_v16  ;;  %v3579_v21 = vld [vmem:[%s4327_s21 + $0xa8] ss:$16 sps:$4 sm:$0xff]   ;;  %v3580_v22 = vld [vmem:[%s4327_s21 + $0x84] ss:$16 sps:$4 sm:$0xff]   ;;  %v3582_v23 = vld [vmem:[%s4327_s21 + $0x80] ss:$16 sps:$4 sm:$0xff]  }
  0xd0   : > { %v3583_v24 = vld [vmem:[%s4327_s21 + $0x88] ss:$16 sps:$4 sm:$0xff]   ;;  %v3584_v25 = vld [vmem:[%s4327_s21 + $0x64] ss:$16 sps:$4 sm:$0xff]   ;;  %v3586_v26 = vld [vmem:[%s4327_s21 + $0x60] ss:$16 sps:$4 sm:$0xff]   ;;  %772 = vmatprep.mubr.bf16.mxu0 %v4011_v29 }
  0xd1   : > { %v3587_v27 = vld [vmem:[%s4327_s21 + $0x68] ss:$16 sps:$4 sm:$0xff]   ;;  %v3588_v28 = vld [vmem:[%s4327_s21 + $0x44] ss:$16 sps:$4 sm:$0xff]   ;;  %vm4012_vm0 = vmmov 0   ;;  %v4404_v56 = vshrl.u32 %v597_v55, 7 }
  0xd2   : > { %v4343_v2 = vld [vmem:[#allocation2] sm:$0xff]  ;;  %v4345_v3 = vld [vmem:[#allocation2 + $0x8] sm:$0xff]  ;;  %743 = vmatpush1.bf16.msra.mxu0 %v3574_v17  ;;  %3374 = vmatpush3.bf16.msra.mxu1 %v3575_v18  ;;  %v522_v58 = vld [vmem:[%s4339_s24] sm:$0x7]  ;;  %s4013_s25 = smov 64   ;;  %vm1185_vm1 = vcmask 523264  }
  0xd3   : > { %528 = vadd.xlane.f32.xlu0 %v4343_v2  ;;  %3375 = vmatprep.subr.bf16.mxu1 %v4010_v6  ;;  %v3590_v30 = vld [vmem:[%s4327_s21 + $0x40] ss:$16 sps:$4 sm:$0xff]   ;;  %v3591_v31 = vld [vmem:[%s4327_s21 + $0x48] ss:$16 sps:$4 sm:$0xff]   ;;  %v3592_v32 = vld [vmem:[%s4327_s21 + $0x24] ss:$16 sps:$4 sm:$0xff]  }
  0xd4   : > { %744 = vmatprep.subr.bf16.mxu0 %v3576_v19  ;;  %3387 = vmatprep.mubr.msk.bf16.mxu1 %vm4012_vm0, %v4010_v6  ;;  %v3594_v33 = vld [vmem:[%s4327_s21 + $0x20] ss:$16 sps:$4 sm:$0xff]   ;;  %v3595_v34 = vld [vmem:[%s4327_s21 + $0x28] ss:$16 sps:$4 sm:$0xff]   ;;  %v3596_v35 = vld [vmem:[%s4327_s21 + $0x4] ss:$16 sps:$4 sm:$0xff]  }
  0xd5   : > { %v3598_v36 = vld [vmem:[%s4327_s21] ss:$16 sps:$4 sm:$0xff]   ;;  %v3599_v37 = vld [vmem:[%s4327_s21 + $0x8] ss:$16 sps:$4 sm:$0xff]   ;;  %v599_v57 = vsub.s32 0, %v4404_v56  ;;  %v603_v59 = vsub.s32 1, %v4404_v56 }
  0xd6   : > { %745 = vmatpush1.bf16.msra.mxu0 %v3578_v20  ;;  %3376 = vmatpush3.bf16.msra.mxu1 %v3579_v21  ;;  %v3201_v46 = vld [vmem:[%s4337_s27] ss:$0 sm:$0xff]  ;;  %v3202_v50 = vld [vmem:[%s4337_s27 + $0x1] ss:$0 sm:$0xff]  ;;  %v607_v61 = vsub.s32 2, %v4404_v56  ;;  %vm1338_vm2 = vcmask 64512  }
  0xd7   : > { %530 = vadd.xlane.f32.xlu0 %v4345_v3  ;;  %3377 = vmatprep.subr.bf16.mxu1 %v4010_v6  ;;  %v600_v60 = vrot.slane %v522_v58, %v599_v57  ;;  %v4416_v0 = vrot.slane %v522_v58, %v603_v59  ;;  %v4015_v17 = vmov 1934713408   ;;  %p3303_p4 = scmp.ne.s32.totalorder %s4097_s0, 2 }
  0xd8   : > { %746 = vmatprep.subr.bf16.mxu0 %v3580_v22  ;;  %v4418_v7 = vrot.slane %v522_v58, %v607_v61  ;;  %v862_v18 = vunpack.c.l.s4 %v4015_v17  ;;  %s2949_s29 = sld [smem:[#allocation4]] (!%p3303_p4) }
  0xd9   : > { %s3304_s14 = sld [smem:[#allocation4 + $0x1]] (!%p3303_p4) }
  0xda   : > { %747 = vmatpush1.bf16.msra.mxu0 %v3582_v23  ;;  %3378 = vmatpush3.bf16.msra.mxu1 %v3583_v24  ;;  %v863_v20 = vunpack.c.0.s8 %v862_v18 }
  0xdb   : > { %748 = vmatprep.subr.bf16.mxu0 %v3584_v25  ;;  %3379 = vmatprep.subr.bf16.mxu1 %v4010_v6 }
  0xdc   : > { %v4434_v24 = vsub.s32 %v863_v20, %v4404_v56 }
  0xde   : > { %749 = vmatpush1.bf16.msra.mxu0 %v3586_v26  ;;  %3380 = vmatpush3.bf16.msra.mxu1 %v3587_v27  ;;  %s2950_s15 = scalar_lea.vmem (!%p3303_p4), [#allocation2], %s2949_s29 }
  0xdf   : > { %750 = vmatprep.subr.bf16.mxu0 %v3588_v28  ;;  %3381 = vmatprep.subr.bf16.mxu1 %v4010_v6  ;;  %s3094_s13 = scalar_lea.vmem (!%p3303_p4), [#allocation2], %s3304_s14 }
  0xe2   : > { %751 = vmatpush1.bf16.msra.mxu0 %v3590_v30  ;;  %3382 = vmatpush3.bf16.msra.mxu1 %v3591_v31 }
  0xe3   : > { %752 = vmatprep.subr.bf16.mxu0 %v3592_v32  ;;  %3383 = vmatprep.subr.bf16.mxu1 %v4010_v6 }
  0xe6   : > { %753 = vmatpush1.bf16.msra.mxu0 %v3594_v33  ;;  %3384 = vmatpush3.bf16.msra.mxu1 %v3595_v34 }
  0xe7   : > { %754 = vmatprep.subr.bf16.mxu0 %v3596_v35  ;;  %3385 = vmatprep.subr.bf16.mxu1 %v4010_v6 }
  0xea   : > { %755 = vmatpush1.bf16.msra.mxu0 %v3598_v36  ;;  %3386 = vmatpush3.bf16.msra.mxu1 %v3599_v37 }
  0xeb   : > { %3391 = vmatprep.subr.mxu1 %v4010_v6  ;;  %3431 = vmatprep.subr.bf16.mxu0 %v4010_v6 }
 0x15c   : > { %v529_v8 = vpop.xlane.xlu0 %528 }
 0x15d   : > { %v533_v9 = vmul.f32 0.0078125, %v529_v8 }
 0x15f   : > { %v4355_v10 = vsub.f32 %v4343_v2, %v533_v9 }
 0x160   : > { %v531_v11 = vpop.xlane.xlu0 %530 }
 0x161   : > { %v534_v12 = vmul.f32 0.0078125, %v531_v11  ;;  %v537_v13 = vmul.f32 %v4355_v10, %v4355_v10 }
 0x163   : > { %v4360_v14 = vsub.f32 %v4345_v3, %v534_v12  ;;  %539 = vadd.xlane.f32.xlu1 %v537_v13 }
 0x165   : > { %v538_v15 = vmul.f32 %v4360_v14, %v4360_v14 }
 0x167   : > { %541 = vadd.xlane.f32.xlu1 %v538_v15 }
 0x1ec   : > { %v540_v38 = vpop.xlane.xlu1 %539 }
 0x1ed   : > { %v543_v39 = vmul.f32 0.0078125, %v540_v38 }
 0x1ef   : > { %v545_v40 = vadd.f32 1e-05, %v543_v39 }
 0x1f0   : > { %v542_v41 = vpop.xlane.xlu1 %541 }
 0x1f1   : > { %3648 = vrsqrt.f32 %v545_v40  ;;  %v544_v42 = vmul.f32 0.0078125, %v542_v41 }
 0x1f3   : > { %v546_v43 = vadd.f32 1e-05, %v544_v42 }
 0x1f5   : > { %3650 = vrsqrt.f32 %v546_v43 }
 0x1fe   : > { %v3649_v44 = vpop.eup %3648 }
 0x1ff   : > { %v549_v45 = vmul.f32 %v3649_v44, %v4355_v10 }
 0x201   : > { %v555_v49 = vmul.f32 %v3201_v46, %v549_v45 }
 0x202   : > { %v3651_v47 = vpop.eup %3650 }
 0x203   : > { %v550_v48 = vmul.f32 %v3651_v47, %v4360_v14  ;;  %v561_v52 = vadd.f32 %v3202_v50, %v555_v49  ;;  %v4014_v14 = vmov 1983009808  }
 0x204   : > { %v831_v15 = vunpack.c.l.s4 %v4014_v14 }
 0x205   : > { %v556_v51 = vmul.f32 %v3201_v46, %v550_v48 }
 0x206   : > { %v832_v16 = vunpack.c.0.s8 %v831_v15 }
 0x207   : > { %v562_v53 = vadd.f32 %v3202_v50, %v556_v51 }
 0x208   : > { %v4429_v19 = vsub.s32 %v832_v16, %v4404_v56 }
 0x209   : > { %v563_v54 = vpack.c.bf16 %v562_v53, %v561_v52 }
 0x20b   : > { %773 = vmatmul.mubr.bf16.vlgmr.msra.gmra.mxu0 %v563_v54  ;;  %3388 = vmatmul.mubr.bf16.vlgmr.msra.gmra.mxu1 %v563_v54 }
 0x20c   : > { %3393 = vmatprep.mubr.msk.f32.mxu1 %vm4012_vm0, %v4010_v6  ;;  %3447 = vmatprep.mubr.msk.bf16.mxu0 %vm4012_vm0, %v4010_v6 }
 0x2cb   : > { %v774_v62 = vpop.f32.mrf.mxu0  ;;  %v4412_v63 = vpop.f32.mrf.mxu1 }
 0x2cc   : > { %v775_v1 = vadd.f32 %v774_v62, %v600_v60 }
 0x2cd   : > { %v776_v4 = vpop.f32.mrf.mxu0  ;;  %v3389_v5 = vpop.f32.mrf.mxu1 }
 0x2ce   : > { %826 = vrot.lane.b32.xlu1 %v775_v1, %s4013_s25  ;;  %v777_v8 = vadd.f32 %v776_v4, %v4416_v0  ;;  %v829_v21 = vcombine.high %v775_v1, %v4010_v6  ;;  %v836_v23 = vrot.slane %v775_v1, %v4429_v19 }
 0x2cf   : > { %v778_v9 = vpop.f32.mrf.mxu0  ;;  %v820_v10 = vpop.f32.mrf.mxu1 }
 0x2d0   : > { %v4422_v11 = vadd.f32 %v778_v9, %v600_v60  ;;  %v4425_v12 = vadd.f32 %v820_v10, %v4418_v7  ;;  %946 = vrot.lane.b32.xlu0 %v777_v8, %s4013_s25  ;;  %v949_v27 = vcombine.high %v777_v8, %v4010_v6  ;;  %v843_v28 = vrot.slane %v829_v21, %v4429_v19 }
 0x2d1   : > { %v3390_v13 = vpop.f32.mrf.mxu1  ;;  %v956_v34 = vrot.slane %v777_v8, %v4429_v19 }
 0x2d2   : > { %v963_v41 = vrot.slane %v949_v27, %v4429_v19 }
 0x340   : > { %v827_v22 = vpop.permute.xlu1 %826 }
 0x341   : > { %v844_v25 = vcombine.high %v827_v22, %v4010_v6  ;;  %v851_v26 = vrot.slane %v827_v22, %v4429_v19 }
 0x342   : > { %v947_v33 = vpop.permute.xlu0 %946 }
 0x343   : > { %v858_v30 = vrot.slane %v844_v25, %v4429_v19  ;;  %v859_v31 = vcombine.low %v836_v23, %v851_v26  ;;  %v860_v32 = vcombine.high %v836_v23, %v851_v26  ;;  %v964_v35 = vcombine.high %v947_v33, %v4010_v6 }
 0x344   : > { %v971_v36 = vrot.slane %v947_v33, %v4429_v19 }
 0x345   : > { %v867_v37 = vrot.slane %v859_v31, %v4434_v24  ;;  %v874_v38 = vrot.slane %v860_v32, %v4434_v24  ;;  %v875_v39 = vcombine.low %v843_v28, %v858_v30  ;;  %v876_v40 = vcombine.high %v843_v28, %v858_v30  ;;  %v4476_v31 = vld [vmem:[#allocation8] sm:$0xff] }
 0x346   : > { %v978_v42 = vrot.slane %v964_v35, %v4429_v19  ;;  %v979_v43 = vcombine.low %v956_v34, %v971_v36  ;;  %v980_v44 = vcombine.high %v956_v34, %v971_v36 }
 0x347   : > { %v883_v45 = vrot.slane %v875_v39, %v4434_v24  ;;  %v890_v46 = vrot.slane %v876_v40, %v4434_v24  ;;  %v895_v51 = vcombine.low %v867_v37, %v874_v38  ;;  %v3227_v52 = vcombine.high %v867_v37, %v874_v38  ;;  %v780_v40 = vpop.f32.mrf.mxu0 }
 0x348   : > { %v987_v47 = vrot.slane %v979_v43, %v4434_v24  ;;  %v994_v48 = vrot.slane %v980_v44, %v4434_v24  ;;  %v995_v49 = vcombine.low %v963_v41, %v978_v42  ;;  %v996_v50 = vcombine.high %v963_v41, %v978_v42 }
 0x349   : > { %v911_v53 = vcombine.low %v883_v45, %v890_v46  ;;  %v3228_v54 = vcombine.high %v883_v45, %v890_v46  ;;  %v902_v10 = vrot.slane %v895_v51, %v4429_v19  ;;  %v910_v13 = vrot.slane %v3227_v52, %v4429_v19 }
 0x34a   : > { %v1003_v55 = vrot.slane %v995_v49, %v4434_v24  ;;  %v1010_v58 = vrot.slane %v996_v50, %v4434_v24  ;;  %v1015_v60 = vcombine.low %v987_v47, %v994_v48  ;;  %v3229_v61 = vcombine.high %v987_v47, %v994_v48 }
 0x34b   : > { %v918_v62 = vrot.slane %v911_v53, %v4429_v19  ;;  %v926_v1 = vrot.slane %v3228_v54, %v4429_v19  ;;  %v927_v20 = vcombine.low %v902_v10, %v910_v13  ;;  %v781_v41 = vadd.f32 %v780_v40, %v4416_v0 }
 0x34c   : > { %v1022_v4 = vrot.slane %v1015_v60, %v4429_v19  ;;  %v1030_v5 = vrot.slane %v3229_v61, %v4429_v19  ;;  %v1031_v8 = vcombine.low %v1003_v55, %v1010_v58  ;;  %v3230_v9 = vcombine.high %v1003_v55, %v1010_v58 }
 0x34d   : > { %v935_v17 = vcombine.low %v918_v62, %v926_v1  ;;  %v934_v26 = vrot.slane %v927_v20, %v4434_v24  ;;  %v818_v51 = vadd.f32 %v4412_v63, %v4418_v7  ;;  %v1752_v54 = vcombine.high %v781_v41, %v4010_v6 }
 0x34e   : > { %v1038_v14 = vrot.slane %v1031_v8, %v4429_v19  ;;  %v1046_v15 = vrot.slane %v3230_v9, %v4429_v19  ;;  %v1047_v16 = vcombine.low %v1022_v4, %v1030_v5  ;;  %v1759_v60 = vrot.slane %v781_v41, %v4429_v19 }
 0x34f   : > { %v942_v23 = vrot.slane %v935_v17, %v4434_v24  ;;  %v1766_v61 = vrot.slane %v1752_v54, %v4429_v19  ;;  %v1069_v5 = vcombine.high %v818_v51, %v4010_v6  ;;  %v1632_v8 = vcombine.high %v4422_v11, %v4010_v6 }
 0x350   : > { %v1055_v18 = vcombine.low %v1038_v14, %v1046_v15  ;;  %v1054_v21 = vrot.slane %v1047_v16, %v4434_v24  ;;  %v1076_v16 = vrot.slane %v818_v51, %v4429_v19 }
 0x351   : > { %v943_v27 = vcombine.low %v934_v26, %v942_v23  ;;  %v944_v30 = vcombine.high %v934_v26, %v942_v23 }
 0x352   : > { %v1062_v22 = vrot.slane %v1055_v18, %v4434_v24 }
 0x354   : > { %v1063_v25 = vcombine.low %v1054_v21, %v1062_v22  ;;  %v1064_v28 = vcombine.high %v1054_v21, %v1062_v22  ;;  %v1083_v21 = vrot.slane %v1069_v5, %v4429_v19  ;;  %v1639_v22 = vrot.slane %v4422_v11, %v4429_v19 }
 0x356   : > { %3392 = vmatpush3.xpose.msk.msra.mxu1 %vm1185_vm1, %v1063_v25 }
 0x357   : > { %3396 = vmatprep.subr.mxu1 %v4010_v6 }
 0x359   : > { %3394 = vmatmul.mubr.msk.f32.vlgmr.msra.gmra.mxu1 %vm1185_vm1, %v943_v27  ;;  %v1646_v27 = vrot.slane %v1632_v8, %v4429_v19 }
 0x35a   : > { %3397 = vmatpush3.xpose.msk.msra.mxu1 %vm1185_vm1, %v1064_v28  ;;  %3398 = vmatprep.mubr.msk.f32.mxu1 %vm4012_vm0, %v4010_v6 }
 0x35b   : > { %3401 = vmatprep.subr.mxu1 %v4010_v6 }
 0x35d   : > { %3399 = vmatmul.mubr.msk.f32.vlgmr.msra.gmra.mxu1 %vm1185_vm1, %v944_v30 }
 0x35e   : > { %3403 = vmatprep.mubr.msk.f32.mxu1 %vm4012_vm0, %v4010_v6 }
 0x419   : > { %v1258_v32 = vpop.f32.mrf.mxu1 }
 0x41a   : > { %v1259_v33 = vadd.f32 %v1258_v32, %v4476_v31 }
 0x41b   : > { %v3395_v34 = vpop.f32.mrf.mxu1 }
 0x41c   : > { %v1339_v35 = vsel %vm1338_vm2, %v1259_v33, -inf }
 0x41d   : > { %1340 = vmax.xlane.f32.xlu1 %v1339_v35  ;;  %v1334_v36 = vpop.f32.mrf.mxu1 }
 0x41e   : > { %v1335_v37 = vadd.f32 %v1334_v36, %v4476_v31 }
 0x41f   : > { %v3400_v38 = vpop.f32.mrf.mxu1 }
 0x420   : > { %v1342_v39 = vsel %vm1338_vm2, %v1335_v37, -inf }
 0x421   : > { %1343 = vmax.xlane.f32.xlu0 %v1342_v39 }
 0x42e   : > { %1749 = vrot.lane.b32.xlu1 %v781_v41, %s4013_s25 }
 0x4a6   : > { %v1341_v42 = vpop.xlane.xlu1 %1340 }
 0x4a7   : > { %v1345_v43 = vsub.f32 %v1259_v33, %v1341_v42 }
 0x4a9   : > { %v1347_v44 = vmul.f32 1.442695, %v1345_v43 }
 0x4aa   : > { %v1344_v45 = vpop.xlane.xlu0 %1343  ;;  %v1750_v52 = vpop.permute.xlu1 %1749 }
 0x4ab   : > { %3652 = vpow2.f32 %v1347_v44  ;;  %v1346_v46 = vsub.f32 %v1335_v37, %v1344_v45  ;;  %v1767_v53 = vcombine.high %v1750_v52, %v4010_v6  ;;  %v1774_v55 = vrot.slane %v1750_v52, %v4429_v19 }
 0x4ad   : > { %v1349_v47 = vmul.f32 1.442695, %v1346_v46  ;;  %v1781_v58 = vrot.slane %v1767_v53, %v4429_v19  ;;  %v1782_v62 = vcombine.low %v1759_v60, %v1774_v55  ;;  %v1783_v63 = vcombine.high %v1759_v60, %v1774_v55 }
 0x4af   : > { %3654 = vpow2.f32 %v1349_v47  ;;  %v1798_v7 = vcombine.low %v1766_v61, %v1781_v58  ;;  %v1799_v1 = vcombine.high %v1766_v61, %v1781_v58  ;;  %v1790_v9 = vrot.slane %v1782_v62, %v4434_v24 }
 0x4b0   : > { %v1797_v10 = vrot.slane %v1783_v63, %v4434_v24 }
 0x4b1   : > { %v1806_v13 = vrot.slane %v1798_v7, %v4434_v24  ;;  %v1813_v14 = vrot.slane %v1799_v1, %v4434_v24 }
 0x4b2   : > { %v1818_v28 = vcombine.low %v1790_v9, %v1797_v10  ;;  %v3243_v30 = vcombine.high %v1790_v9, %v1797_v10 }
 0x4b3   : > { %v1834_v32 = vcombine.low %v1806_v13, %v1813_v14  ;;  %v3244_v38 = vcombine.high %v1806_v13, %v1813_v14 }
 0x4b4   : > { %v1825_v8 = vrot.slane %v1818_v28, %v4429_v19  ;;  %v1833_v9 = vrot.slane %v3243_v30, %v4429_v19 }
 0x4b5   : > { %v1841_v44 = vrot.slane %v1834_v32, %v4429_v19  ;;  %v1849_v60 = vrot.slane %v3244_v38, %v4429_v19 }
 0x4b8   : > { %v4484_v48 = vpop.eup %3652 }
 0x4b9   : > { %v1351_v49 = vsel %vm1338_vm2, %v4484_v48, 0.0 }
 0x4ba   : > { %1352 = vadd.xlane.f32.xlu0 %v1351_v49 }
 0x4bc   : > { %v4488_v50 = vpop.eup %3654 }
 0x4bd   : > { %v1354_v0 = vsel %vm1338_vm2, %v4488_v50, 0.0 }
 0x4be   : > { %1355 = vadd.xlane.f32.xlu1 %v1354_v0 }
 0x4cf   : > { %1629 = vrot.lane.b32.xlu1 %v4422_v11, %s4013_s25 }
 0x4d0   : > { %1066 = vrot.lane.b32.xlu0 %v818_v51, %s4013_s25 }
 0x543   : > { %v1353_v4 = vpop.xlane.xlu0 %1352 }
 0x544   : > { %3656 = vrcp.f32 %v1353_v4 }
 0x547   : > { %v1067_v15 = vpop.permute.xlu0 %1066  ;;  %v1356_v17 = vpop.xlane.xlu1 %1355 }
 0x548   : > { %v1084_v18 = vcombine.high %v1067_v15, %v4010_v6  ;;  %v1091_v20 = vrot.slane %v1067_v15, %v4429_v19  ;;  %3658 = vrcp.f32 %v1356_v17 }
 0x54a   : > { %v1098_v23 = vrot.slane %v1084_v18, %v4429_v19  ;;  %v1099_v25 = vcombine.low %v1076_v16, %v1091_v20  ;;  %v1100_v26 = vcombine.high %v1076_v16, %v1091_v20  ;;  %v1858_v16 = vcombine.low %v1841_v44, %v1849_v60 }
 0x54b   : > { %v1630_v37 = vpop.permute.xlu1 %1629 }
 0x54c   : > { %v1107_v33 = vrot.slane %v1099_v25, %v4434_v24  ;;  %v1114_v34 = vrot.slane %v1100_v26, %v4434_v24  ;;  %v1115_v35 = vcombine.low %v1083_v21, %v1098_v23  ;;  %v1116_v36 = vcombine.high %v1083_v21, %v1098_v23 }
 0x54d   : > { %v1647_v11 = vcombine.high %v1630_v37, %v4010_v6  ;;  %v1654_v39 = vrot.slane %v1630_v37, %v4429_v19  ;;  %v1850_v25 = vcombine.low %v1825_v8, %v1833_v9 }
 0x54e   : > { %v1123_v40 = vrot.slane %v1115_v35, %v4434_v24  ;;  %v1130_v41 = vrot.slane %v1116_v36, %v4434_v24  ;;  %v1135_v42 = vcombine.low %v1107_v33, %v1114_v34  ;;  %v3231_v43 = vcombine.high %v1107_v33, %v1114_v34 }
 0x54f   : > { %v1661_v45 = vrot.slane %v1647_v11, %v4429_v19  ;;  %v1662_v46 = vcombine.low %v1639_v22, %v1654_v39  ;;  %v1663_v47 = vcombine.high %v1639_v22, %v1654_v39  ;;  %v1865_v33 = vrot.slane %v1858_v16, %v4434_v24 }
 0x550   : > { %v1142_v49 = vrot.slane %v1135_v42, %v4429_v19  ;;  %v1150_v0 = vrot.slane %v3231_v43, %v4429_v19  ;;  %v1151_v51 = vcombine.low %v1123_v40, %v1130_v41  ;;  %v3232_v52 = vcombine.high %v1123_v40, %v1130_v41 }
 0x551   : > { %v1670_v53 = vrot.slane %v1662_v46, %v4434_v24  ;;  %v1677_v54 = vrot.slane %v1663_v47, %v4434_v24  ;;  %v1678_v55 = vcombine.low %v1646_v27, %v1661_v45  ;;  %v1679_v58 = vcombine.high %v1646_v27, %v1661_v45  ;;  %v3657_v15 = vpop.eup %3656 }
 0x552   : > { %v1158_v61 = vrot.slane %v1151_v51, %v4429_v19  ;;  %v1166_v62 = vrot.slane %v3232_v52, %v4429_v19  ;;  %v1167_v63 = vcombine.low %v1142_v49, %v1150_v0  ;;  %v1359_v28 = vmul.f32 %v3657_v15, %v4484_v48 }
 0x553   : > { %v1686_v7 = vrot.slane %v1678_v55, %v4434_v24  ;;  %v1693_v1 = vrot.slane %v1679_v58, %v4434_v24  ;;  %v1698_v4 = vcombine.low %v1670_v53, %v1677_v54  ;;  %v3241_v5 = vcombine.high %v1670_v53, %v1677_v54 }
 0x554   : > { %v1175_v10 = vcombine.low %v1158_v61, %v1166_v62  ;;  %v1174_v17 = vrot.slane %v1167_v63, %v4434_v24  ;;  %v1857_v35 = vrot.slane %v1850_v25, %v4434_v24 }
 0x555   : > { %v1714_v13 = vcombine.low %v1686_v7, %v1693_v1  ;;  %v3242_v14 = vcombine.high %v1686_v7, %v1693_v1  ;;  %v1705_v20 = vrot.slane %v1698_v4, %v4429_v19  ;;  %v1713_v21 = vrot.slane %v3241_v5, %v4429_v19  ;;  %v3659_v30 = vpop.eup %3658 }
 0x556   : > { %v1182_v18 = vrot.slane %v1175_v10, %v4434_v24  ;;  %v1360_v48 = vmul.f32 %v3659_v30, %v4488_v50  ;;  %v1866_v37 = vcombine.low %v1857_v35, %v1865_v33  ;;  %v1867_v39 = vcombine.high %v1857_v35, %v1865_v33 }
 0x557   : > { %v1721_v22 = vrot.slane %v1714_v13, %v4429_v19  ;;  %v1729_v23 = vrot.slane %v3242_v14, %v4429_v19  ;;  %v1730_v34 = vcombine.low %v1705_v20, %v1713_v21  ;;  %v1872_v30 = vcombine.high %v4425_v12, %v4010_v6 }
 0x558   : > { %v1183_v26 = vcombine.low %v1174_v17, %v1182_v18  ;;  %v1184_v32 = vcombine.high %v1174_v17, %v1182_v18  ;;  %v1879_v33 = vrot.slane %v4425_v12, %v4429_v19 }
 0x559   : > { %v1738_v27 = vcombine.low %v1721_v22, %v1729_v23  ;;  %v1737_v38 = vrot.slane %v1730_v34, %v4434_v24 }
 0x55a   : > { %3402 = vmatpush3.msra.mxu1 %v1183_v26 }
 0x55b   : > { %3404 = vmatmul.mubr.msk.f32.vlgmr.msra.gmra.mxu1 %vm1338_vm2, %v1359_v28  ;;  %3406 = vmatprep.subr.mxu1 %v4010_v6  ;;  %v1745_v36 = vrot.slane %v1738_v27, %v4434_v24 }
 0x55c   : > { %3407 = vmatpush3.msra.mxu1 %v1184_v32  ;;  %3408 = vmatprep.mubr.msk.f32.mxu1 %vm4012_vm0, %v4010_v6 }
 0x55d   : > { %3411 = vmatprep.subr.mxu1 %v4010_v6  ;;  %v1746_v11 = vcombine.low %v1737_v38, %v1745_v36  ;;  %v1747_v50 = vcombine.high %v1737_v38, %v1745_v36  ;;  %v1886_v38 = vrot.slane %v1872_v30, %v4429_v19 }
 0x55f   : > { %3409 = vmatmul.mubr.msk.f32.vlgmr.msra.gmra.mxu1 %vm1338_vm2, %v1360_v48 }
 0x560   : > { %3412 = vmatpush3.xpose.msk.msra.mxu1 %vm1185_vm1, %v1866_v37  ;;  %3413 = vmatprep.mubr.msk.f32.mxu1 %vm4012_vm0, %v4010_v6 }
 0x561   : > { %3416 = vmatprep.subr.mxu1 %v4010_v6 }
 0x563   : > { %3414 = vmatmul.mubr.msk.f32.vlgmr.msra.gmra.mxu1 %vm1185_vm1, %v1746_v11 }
 0x564   : > { %3417 = vmatpush3.xpose.msk.msra.mxu1 %vm1185_vm1, %v1867_v39  ;;  %3418 = vmatprep.mubr.msk.f32.mxu1 %vm4012_vm0, %v4010_v6 }
 0x565   : > { %3421 = vmatprep.subr.mxu1 %v4010_v6 }
 0x567   : > { %3419 = vmatmul.mubr.msk.f32.vlgmr.msra.gmra.mxu1 %vm1185_vm1, %v1747_v50 }
 0x568   : > { %3423 = vmatprep.mubr.msk.f32.mxu1 %vm4012_vm0, %v4010_v6 }
 0x61b   : > { %v1430_v40 = vpop.f32.mrf.mxu1 }
 0x61c   : > { %v1507_v42 = vcombine.high %v1430_v40, %v4010_v6  ;;  %v1514_v44 = vrot.slane %v1430_v40, %v4429_v19 }
 0x61d   : > { %v3405_v41 = vpop.f32.mrf.mxu1 }
 0x61e   : > { %v1521_v49 = vrot.slane %v1507_v42, %v4429_v19 }
 0x61f   : > { %v1503_v43 = vpop.f32.mrf.mxu1 }
 0x620   : > { %v1522_v45 = vcombine.high %v1503_v43, %v4010_v6  ;;  %v1529_v46 = vrot.slane %v1503_v43, %v4429_v19 }
 0x621   : > { %v3410_v47 = vpop.f32.mrf.mxu1 }
 0x622   : > { %v1536_v0 = vrot.slane %v1522_v45, %v4429_v19  ;;  %v1537_v51 = vcombine.low %v1514_v44, %v1529_v46  ;;  %v1538_v52 = vcombine.high %v1514_v44, %v1529_v46 }
 0x623   : > { %v2060_v53 = vpop.f32.mrf.mxu1 }
 0x624   : > { %v1545_v54 = vrot.slane %v1537_v51, %v4434_v24  ;;  %v1552_v55 = vrot.slane %v1538_v52, %v4434_v24  ;;  %v1553_v58 = vcombine.low %v1521_v49, %v1536_v0  ;;  %v1554_v60 = vcombine.high %v1521_v49, %v1536_v0 }
 0x625   : > { %v2061_v61 = vadd.f32 %v2060_v53, %v4476_v31  ;;  %v3415_v62 = vpop.f32.mrf.mxu1 }
 0x626   : > { %v1561_v63 = vrot.slane %v1553_v58, %v4434_v24  ;;  %v1568_v7 = vrot.slane %v1554_v60, %v4434_v24  ;;  %v1573_v1 = vcombine.low %v1545_v54, %v1552_v55  ;;  %v3239_v4 = vcombine.high %v1545_v54, %v1552_v55 }
 0x627   : > { %v2140_v5 = vsel %vm1338_vm2, %v2061_v61, -inf  ;;  %v2136_v8 = vpop.f32.mrf.mxu1 }
 0x628   : > { %v1580_v9 = vrot.slane %v1573_v1, %v4429_v19  ;;  %v1588_v10 = vrot.slane %v3239_v4, %v4429_v19  ;;  %v1589_v13 = vcombine.low %v1561_v63, %v1568_v7  ;;  %v3240_v14 = vcombine.high %v1561_v63, %v1568_v7  ;;  %2141 = vmax.xlane.f32.xlu1 %v2140_v5 }
 0x629   : > { %v2137_v15 = vadd.f32 %v2136_v8, %v4476_v31  ;;  %v3420_v16 = vpop.f32.mrf.mxu1 }
 0x62a   : > { %v1596_v17 = vrot.slane %v1589_v13, %v4429_v19  ;;  %v1604_v18 = vrot.slane %v3240_v14, %v4429_v19  ;;  %v1605_v20 = vcombine.low %v1580_v9, %v1588_v10  ;;  %v3600_v16 = vld [vmem:[%s4327_s21 + $0xec] ss:$16 sps:$4 sm:$0xff]  }
 0x62b   : > { %v2143_v21 = vsel %vm1338_vm2, %v2137_v15, -inf  ;;  %3432 = vmatpush3.bf16.msra.mxu0 %v3600_v16  ;;  %v3610_v16 = vld [vmem:[%s4333_s23 + $0x74] ss:$8 sps:$4 sm:$0xff]  }
 0x62c   : > { %2144 = vmax.xlane.f32.xlu0 %v2143_v21  ;;  %v1613_v22 = vcombine.low %v1596_v17, %v1604_v18  ;;  %v4586_v23 = vrot.slane %v1605_v20, %v4434_v24  ;;  %v3601_v17 = vld [vmem:[%s4327_s21 + $0xcc] ss:$16 sps:$4 sm:$0xff]   ;;  %3433 = vmatprep.subr.bf16.mxu0 %v4010_v6 }
 0x62d   : > { %v3602_v18 = vld [vmem:[%s4327_s21 + $0xac] ss:$16 sps:$4 sm:$0xff]  }
 0x62e   : > { %v4589_v25 = vrot.slane %v1613_v22, %v4434_v24  ;;  %v3603_v20 = vld [vmem:[%s4327_s21 + $0x8c] ss:$16 sps:$4 sm:$0xff]  }
 0x62f   : > { %3434 = vmatpush3.bf16.msra.mxu0 %v3601_v17  ;;  %v3604_v21 = vld [vmem:[%s4327_s21 + $0x6c] ss:$16 sps:$4 sm:$0xff]  }
 0x630   : > { %v1621_v26 = vcombine.low %v4586_v23, %v4589_v25  ;;  %v1622_v31 = vcombine.high %v4586_v23, %v4589_v25  ;;  %3435 = vmatprep.subr.bf16.mxu0 %v4010_v6  ;;  %v3606_v22 = vld [vmem:[%s4327_s21 + $0x2c] ss:$16 sps:$4 sm:$0xff]   ;;  %v3689_v25 = vld [vmem:[#allocation2 + $0x8] sm:$0xff] }
 0x633   : > { %3436 = vmatpush3.bf16.msra.mxu0 %v3602_v18 }
 0x634   : > { %3437 = vmatprep.subr.bf16.mxu0 %v4010_v6 }
 0x637   : > { %3438 = vmatpush3.bf16.msra.mxu0 %v3603_v20 }
 0x638   : > { %3439 = vmatprep.subr.bf16.mxu0 %v4010_v6 }
 0x639   : > { %1869 = vrot.lane.b32.xlu1 %v4425_v12, %s4013_s25 }
 0x63b   : > { %3440 = vmatpush3.bf16.msra.mxu0 %v3604_v21 }
 0x63c   : > { %3441 = vmatprep.subr.bf16.mxu0 %v4010_v6 }
 0x6b1   : > { %v2142_v27 = vpop.xlane.xlu1 %2141 }
 0x6b2   : > { %v2146_v28 = vsub.f32 %v2061_v61, %v2142_v27 }
 0x6b4   : > { %v2148_v32 = vmul.f32 1.442695, %v2146_v28 }
 0x6b5   : > { %v1870_v34 = vpop.permute.xlu1 %1869  ;;  %v2145_v35 = vpop.xlane.xlu0 %2144 }
 0x6b6   : > { %3660 = vpow2.f32 %v2148_v32  ;;  %v1887_v48 = vcombine.high %v1870_v34, %v4010_v6  ;;  %v1894_v36 = vrot.slane %v1870_v34, %v4429_v19  ;;  %v2147_v37 = vsub.f32 %v2137_v15, %v2145_v35 }
 0x6b8   : > { %v1901_v11 = vrot.slane %v1887_v48, %v4429_v19  ;;  %v1902_v39 = vcombine.low %v1879_v33, %v1894_v36  ;;  %v1903_v50 = vcombine.high %v1879_v33, %v1894_v36  ;;  %v2150_v40 = vmul.f32 1.442695, %v2147_v37 }
 0x6ba   : > { %v1910_v41 = vrot.slane %v1902_v39, %v4434_v24  ;;  %v1917_v42 = vrot.slane %v1903_v50, %v4434_v24  ;;  %v1918_v12 = vcombine.low %v1886_v38, %v1901_v11  ;;  %v1919_v43 = vcombine.high %v1886_v38, %v1901_v11 }
 0x6bb   : > { %3662 = vpow2.f32 %v2150_v40 }
 0x6bc   : > { %v1926_v44 = vrot.slane %v1918_v12, %v4434_v24  ;;  %v1933_v45 = vrot.slane %v1919_v43, %v4434_v24  ;;  %v1938_v46 = vcombine.low %v1910_v41, %v1917_v42  ;;  %v3245_v47 = vcombine.high %v1910_v41, %v1917_v42 }
 0x6be   : > { %v1945_v49 = vrot.slane %v1938_v46, %v4429_v19  ;;  %v1953_v0 = vrot.slane %v3245_v47, %v4429_v19  ;;  %v1954_v51 = vcombine.low %v1926_v44, %v1933_v45  ;;  %v3246_v52 = vcombine.high %v1926_v44, %v1933_v45  ;;  %v3607_v44 = vld [vmem:[%s4327_s21 + $0xc] ss:$16 sps:$4 sm:$0xff]  }
 0x6c0   : > { %v1961_v53 = vrot.slane %v1954_v51, %v4429_v19  ;;  %v1969_v54 = vrot.slane %v3246_v52, %v4429_v19  ;;  %v1970_v55 = vcombine.low %v1945_v49, %v1953_v0 }
 0x6c2   : > { %v1978_v58 = vcombine.low %v1961_v53, %v1969_v54  ;;  %v1977_v62 = vrot.slane %v1970_v55, %v4434_v24 }
 0x6c3   : > { %v3661_v60 = vpop.eup %3660 }
 0x6c4   : > { %v2152_v61 = vsel %vm1338_vm2, %v3661_v60, 0.0  ;;  %v1985_v63 = vrot.slane %v1978_v58, %v4434_v24 }
 0x6c5   : > { %2153 = vadd.xlane.f32.xlu0 %v2152_v61 }
 0x6c6   : > { %v1986_v7 = vcombine.low %v1977_v62, %v1985_v63  ;;  %v1987_v1 = vcombine.high %v1977_v62, %v1985_v63 }
 0x6c8   : > { %v3663_v4 = vpop.eup %3662  ;;  %3422 = vmatpush3.msra.mxu1 %v1986_v7 }
 0x6c9   : > { %v2155_v5 = vsel %vm1338_vm2, %v3663_v4, 0.0  ;;  %3426 = vmatprep.subr.mxu1 %v4010_v6 }
 0x6ca   : > { %2156 = vadd.xlane.f32.xlu0 %v2155_v5 }
 0x74e   : > { %v2154_v8 = vpop.xlane.xlu0 %2153 }
 0x74f   : > { %3664 = vrcp.f32 %v2154_v8 }
 0x753   : > { %v2157_v9 = vpop.xlane.xlu0 %2156 }
 0x754   : > { %3666 = vrcp.f32 %v2157_v9  ;;  %v3688_v9 = vld [vmem:[#allocation2] sm:$0xff] }
 0x75c   : > { %v3665_v10 = vpop.eup %3664 }
 0x75d   : > { %v2160_v13 = vmul.f32 %v3665_v10, %v3661_v60 }
 0x75f   : > { %3424 = vmatmul.mubr.msk.f32.vlgmr.msra.gmra.mxu1 %vm1338_vm2, %v2160_v13 }
 0x760   : > { %3427 = vmatpush3.msra.mxu1 %v1987_v1  ;;  %3428 = vmatprep.mubr.msk.f32.mxu1 %vm4012_vm0, %v4010_v6 }
 0x761   : > { %v3667_v14 = vpop.eup %3666  ;;  %2687 = vmatprep.subr.bf16.mxu1 %v3610_v16 }
 0x762   : > { %v2161_v15 = vmul.f32 %v3667_v14, %v3663_v4  ;;  %v3255_v4 = vld [vmem:[%s4339_s24 + $0x3] ss:$0 sm:$0xff] }
 0x764   : > { %3429 = vmatmul.mubr.msk.f32.vlgmr.msra.gmra.mxu1 %vm1338_vm2, %v2161_v15  ;;  %v3608_v15 = vld [vmem:[%s4333_s23 + $0x70] ss:$8 sps:$4 sm:$0xff]  }
 0x765   : > { %2719 = vmatprep.mubr.bf16.mxu1 %v4011_v29  ;;  %v3605_v29 = vld [vmem:[%s4327_s21 + $0x4c] ss:$16 sps:$4 sm:$0xff]   ;;  %2688 = vmatpush1.bf16.msra.mxu1 %v3608_v15 }
 0x766   : > { %3442 = vmatpush3.bf16.msra.mxu0 %v3605_v29  ;;  %v524_v15 = vld [vmem:[%s4339_s24 + $0x4] sm:$0x3] }
 0x767   : > { %3443 = vmatprep.subr.bf16.mxu0 %v4010_v6  ;;  %v2600_v16 = vrot.slane %v524_v15, %v599_v57 }
 0x76a   : > { %3444 = vmatpush3.bf16.msra.mxu0 %v3606_v22 }
 0x76b   : > { %3445 = vmatprep.subr.bf16.mxu0 %v4010_v6 }
 0x76e   : > { %3446 = vmatpush3.bf16.msra.mxu0 %v3607_v44 }
 0x81f   : > { %v2231_v27 = vpop.f32.mrf.mxu1 }
 0x820   : > { %v2308_v30 = vcombine.high %v2231_v27, %v4010_v6  ;;  %v2315_v33 = vrot.slane %v2231_v27, %v4429_v19 }
 0x821   : > { %v3425_v28 = vpop.f32.mrf.mxu1 }
 0x822   : > { %v2322_v36 = vrot.slane %v2308_v30, %v4429_v19  ;;  %v3613_v30 = vld [vmem:[%s4333_s23 + $0x64] ss:$8 sps:$4 sm:$0xff]  }
 0x823   : > { %2689 = vmatprep.subr.bf16.mxu1 %v3613_v30 }
 0x824   : > { %v2304_v32 = vpop.f32.mrf.mxu1 }
 0x825   : > { %v2323_v34 = vcombine.high %v2304_v32, %v4010_v6  ;;  %v2330_v35 = vrot.slane %v2304_v32, %v4429_v19  ;;  %v3611_v32 = vld [vmem:[%s4333_s23 + $0x60] ss:$8 sps:$4 sm:$0xff]  }
 0x826   : > { %v3430_v48 = vpop.f32.mrf.mxu1  ;;  %2690 = vmatpush1.bf16.msra.mxu1 %v3611_v32 }
 0x827   : > { %v2337_v37 = vrot.slane %v2323_v34, %v4429_v19  ;;  %v2338_v38 = vcombine.low %v2315_v33, %v2330_v35  ;;  %v2339_v11 = vcombine.high %v2315_v33, %v2330_v35  ;;  %v3616_v33 = vld [vmem:[%s4333_s23 + $0x54] ss:$8 sps:$4 sm:$0xff]   ;;  %v3614_v34 = vld [vmem:[%s4333_s23 + $0x50] ss:$8 sps:$4 sm:$0xff]   ;;  %v3617_v35 = vld [vmem:[%s4333_s23 + $0x40] ss:$8 sps:$4 sm:$0xff]  }
 0x828   : > { %2691 = vmatprep.subr.bf16.mxu1 %v3616_v33  ;;  %v3619_v48 = vld [vmem:[%s4333_s23 + $0x44] ss:$8 sps:$4 sm:$0xff]  }
 0x829   : > { %v2346_v39 = vrot.slane %v2338_v38, %v4434_v24  ;;  %v2353_v50 = vrot.slane %v2339_v11, %v4434_v24  ;;  %v2354_v40 = vcombine.low %v2322_v36, %v2337_v37  ;;  %v2355_v41 = vcombine.high %v2322_v36, %v2337_v37  ;;  %v3622_v36 = vld [vmem:[%s4333_s23 + $0x34] ss:$8 sps:$4 sm:$0xff]   ;;  %v3620_v37 = vld [vmem:[%s4333_s23 + $0x30] ss:$8 sps:$4 sm:$0xff]   ;;  %v3625_v38 = vld [vmem:[%s4333_s23 + $0x24] ss:$8 sps:$4 sm:$0xff]  }
 0x82a   : > { %2692 = vmatpush1.bf16.msra.mxu1 %v3614_v34  ;;  %v3623_v11 = vld [vmem:[%s4333_s23 + $0x20] ss:$8 sps:$4 sm:$0xff]  }
 0x82b   : > { %v2362_v42 = vrot.slane %v2354_v40, %v4434_v24  ;;  %v2369_v12 = vrot.slane %v2355_v41, %v4434_v24  ;;  %v2374_v6 = vcombine.low %v2346_v39, %v2353_v50  ;;  %v3253_v43 = vcombine.high %v2346_v39, %v2353_v50  ;;  %2693 = vmatprep.subr.bf16.mxu1 %v3619_v48  ;;  %v3628_v39 = vld [vmem:[%s4333_s23 + $0x14] ss:$8 sps:$4 sm:$0xff]   ;;  %v3626_v50 = vld [vmem:[%s4333_s23 + $0x10] ss:$8 sps:$4 sm:$0xff]   ;;  %v3631_v40 = vld [vmem:[%s4333_s23 + $0x4] ss:$8 sps:$4 sm:$0xff]  }
 0x82c   : > { %v3629_v41 = vld [vmem:[%s4333_s23] ss:$8 sps:$4 sm:$0xff]  }
 0x82d   : > { %v2381_v45 = vrot.slane %v2374_v6, %v4429_v19  ;;  %v2389_v46 = vrot.slane %v3253_v43, %v4429_v19  ;;  %v2390_v47 = vcombine.low %v2362_v42, %v2369_v12  ;;  %v3254_v49 = vcombine.high %v2362_v42, %v2369_v12 }
 0x82e   : > { %2694 = vmatpush1.bf16.msra.mxu1 %v3617_v35 }
 0x82f   : > { %v2397_v0 = vrot.slane %v2390_v47, %v4429_v19  ;;  %v2405_v51 = vrot.slane %v3254_v49, %v4429_v19  ;;  %v2406_v52 = vcombine.low %v2381_v45, %v2389_v46  ;;  %2695 = vmatprep.subr.bf16.mxu1 %v3622_v36  ;;  %v3264_v49 = vld [vmem:[%s4337_s27 + $0x2] ss:$0 sm:$0xff] }
 0x831   : > { %v2414_v53 = vcombine.low %v2397_v0, %v2405_v51  ;;  %v2413_v54 = vrot.slane %v2406_v52, %v4434_v24 }
 0x832   : > { %2696 = vmatpush1.bf16.msra.mxu1 %v3620_v37 }
 0x833   : > { %v2421_v55 = vrot.slane %v2414_v53, %v4434_v24  ;;  %2697 = vmatprep.subr.bf16.mxu1 %v3625_v38  ;;  %v3265_v53 = vld [vmem:[%s4337_s27 + $0x3] ss:$0 sm:$0xff] }
 0x835   : > { %v2423_v58 = vcombine.high %v2413_v54, %v2421_v55  ;;  %v2422_v60 = vcombine.low %v2413_v54, %v2421_v55 }
 0x836   : > { %2698 = vmatpush1.bf16.msra.mxu1 %v3623_v11 }
 0x837   : > { %v3563_v61 = vpack.i.bf16 %v2423_v58, %v1622_v31  ;;  %2699 = vmatprep.subr.bf16.mxu1 %v3628_v39 }
 0x839   : > { %3564 = vrot.lane.b32.xlu0 %v3563_v61, %s4013_s25  ;;  %v3632_v61 = vld [vmem:[%s4335_s9 + $0x78] sm:$0xff]  }
 0x83a   : > { %2700 = vmatpush1.bf16.msra.mxu1 %v3626_v50  ;;  %3349 = vmatprep.subr.bf16.mxu0 %v3632_v61 }
 0x83b   : > { %2701 = vmatprep.subr.bf16.mxu1 %v3631_v40 }
 0x83e   : > { %2702 = vmatpush1.bf16.msra.mxu1 %v3629_v41 }
 0x8ab   : > { %v3565_v62 = vpop.permute.xlu0 %3564 }
 0x8ac   : > { %v3567_v63 = vunpack.i.h.bf16 %v3565_v62  ;;  %v3566_v7 = vunpack.i.l.bf16 %v3565_v62  ;;  %v3633_v62 = vld [vmem:[%s4335_s9 + $0x38] sm:$0xff]  }
 0x8ae   : > { %v1627_v19 = vsel %vm1185_vm1, %v1621_v26, %v3566_v7  ;;  %v2428_v1 = vsel %vm1185_vm1, %v2422_v60, %v3567_v63  ;;  %v3634_v63 = vld [vmem:[%s4335_s9 + $0x70] sm:$0xff]  }
 0x8af   : > { %v2429_v24 = vpack.c.bf16 %v2428_v1, %v1627_v19  ;;  %v3635_v7 = vld [vmem:[%s4335_s9 + $0x30] sm:$0xff]   ;;  %v3636_v19 = vld [vmem:[%s4335_s9 + $0x68] sm:$0xff]  }
 0x8b0   : > { %v3637_v1 = vld [vmem:[%s4335_s9 + $0x28] sm:$0xff]  }
 0x8b1   : > { %3448 = vmatmul.mubr.bf16.vlgmr.msra.gmra.mxu0 %v2429_v24  ;;  %v3638_v24 = vld [vmem:[%s4335_s9 + $0x60] sm:$0xff]  }
 0x8b2   : > { %3350 = vmatpush3.bf16.msra.mxu0 %v3633_v62 }
 0x8b3   : > { %3351 = vmatprep.subr.bf16.mxu0 %v3634_v63 }
 0x8b6   : > { %3352 = vmatpush3.bf16.msra.mxu0 %v3635_v7 }
 0x8b7   : > { %3353 = vmatprep.subr.bf16.mxu0 %v3636_v19 }
 0x8ba   : > { %3354 = vmatpush3.bf16.msra.mxu0 %v3637_v1 }
 0x8bb   : > { %3355 = vmatprep.subr.bf16.mxu0 %v3638_v24 }
 0x971   : > { %v2534_v5 = vpop.f32.mrf.mxu0 }
 0x972   : > { %v2535_v8 = vadd.f32 %v3255_v4, %v2534_v5  ;;  %v3640_v5 = vld [vmem:[%s4335_s9 + $0x58] sm:$0xff]  }
 0x973   : > { %v3449_v31 = vpop.f32.mrf.mxu0 }
 0x974   : > { %v4664_v10 = vadd.f32 %v3688_v9, %v2535_v8  ;;  %v3641_v8 = vld [vmem:[%s4335_s9 + $0x18] sm:$0xff]   ;;  %v3642_v31 = vld [vmem:[%s4335_s9 + $0x50] sm:$0xff]  }
 0x975   : > { %v2537_v13 = vpop.f32.mrf.mxu0  ;;  %v3643_v9 = vld [vmem:[%s4335_s9 + $0x10] sm:$0xff]  }
 0x976   : > { %v2538_v14 = vadd.f32 %v3255_v4, %v2537_v13  ;;  %2545 = vadd.xlane.f32.xlu1 %v4664_v10  ;;  %v3639_v4 = vld [vmem:[%s4335_s9 + $0x20] sm:$0xff]   ;;  %v3644_v13 = vld [vmem:[%s4335_s9 + $0x48] sm:$0xff]  }
 0x977   : > { %v3450_v23 = vpop.f32.mrf.mxu0  ;;  %3356 = vmatpush3.bf16.msra.mxu0 %v3639_v4 }
 0x978   : > { %v4667_v26 = vadd.f32 %v3689_v25, %v2538_v14  ;;  %3357 = vmatprep.subr.bf16.mxu0 %v3640_v5  ;;  %v3645_v14 = vld [vmem:[%s4335_s9 + $0x8] sm:$0xff]   ;;  %v3646_v23 = vld [vmem:[%s4335_s9 + $0x40] sm:$0xff]  }
 0x979   : > { %v3647_v25 = vld [vmem:[%s4335_s9] sm:$0xff]  }
 0x97a   : > { %2547 = vadd.xlane.f32.xlu0 %v4667_v26 }
 0x97b   : > { %3358 = vmatpush3.bf16.msra.mxu0 %v3641_v8 }
 0x97c   : > { %3359 = vmatprep.subr.bf16.mxu0 %v3642_v31 }
 0x97f   : > { %3360 = vmatpush3.bf16.msra.mxu0 %v3643_v9 }
 0x980   : > { %3361 = vmatprep.subr.bf16.mxu0 %v3644_v13 }
 0x983   : > { %3362 = vmatpush3.bf16.msra.mxu0 %v3645_v14 }
 0x984   : > { %3363 = vmatprep.subr.bf16.mxu0 %v3646_v23 }
 0x987   : > { %3364 = vmatpush3.bf16.msra.mxu0 %v3647_v25 }
 0x9ff   : > { %v2546_v17 = vpop.xlane.xlu1 %2545 }
 0xa00   : > { %v2549_v18 = vmul.f32 0.0078125, %v2546_v17  ;;  %v2604_v17 = vrot.slane %v524_v15, %v603_v59 }
 0xa02   : > { %v2551_v20 = vsub.f32 %v4664_v10, %v2549_v18 }
 0xa03   : > { %v2548_v21 = vpop.xlane.xlu0 %2547 }
 0xa04   : > { %v2550_v29 = vmul.f32 0.0078125, %v2548_v21  ;;  %v2553_v22 = vmul.f32 %v2551_v20, %v2551_v20 }
 0xa06   : > { %v2552_v27 = vsub.f32 %v4667_v26, %v2550_v29  ;;  %2555 = vadd.xlane.f32.xlu1 %v2553_v22 }
 0xa08   : > { %v2554_v28 = vmul.f32 %v2552_v27, %v2552_v27 }
 0xa0a   : > { %2557 = vadd.xlane.f32.xlu0 %v2554_v28 }
 0xa8f   : > { %v2556_v42 = vpop.xlane.xlu1 %2555 }
 0xa90   : > { %v2559_v12 = vmul.f32 0.0078125, %v2556_v42 }
 0xa92   : > { %v2561_v6 = vadd.f32 1e-05, %v2559_v12 }
 0xa93   : > { %v2558_v43 = vpop.xlane.xlu0 %2557 }
 0xa94   : > { %3668 = vrsqrt.f32 %v2561_v6  ;;  %v2560_v44 = vmul.f32 0.0078125, %v2558_v43 }
 0xa96   : > { %v2562_v45 = vadd.f32 1e-05, %v2560_v44 }
 0xa98   : > { %3670 = vrsqrt.f32 %v2562_v45 }
 0xaa1   : > { %v3669_v46 = vpop.eup %3668 }
 0xaa2   : > { %v2565_v47 = vmul.f32 %v3669_v46, %v2551_v20 }
 0xaa4   : > { %v2571_v52 = vmul.f32 %v3264_v49, %v2565_v47 }
 0xaa5   : > { %v3671_v0 = vpop.eup %3670 }
 0xaa6   : > { %v2566_v51 = vmul.f32 %v3671_v0, %v2552_v27  ;;  %v2577_v55 = vadd.f32 %v3265_v53, %v2571_v52  ;;  %v3286_v52 = vld [vmem:[%s4339_s24 + $0x6] ss:$0 sm:$0xff] }
 0xaa8   : > { %v2572_v54 = vmul.f32 %v3264_v49, %v2566_v51 }
 0xaaa   : > { %v2578_v58 = vadd.f32 %v3265_v53, %v2572_v54 }
 0xaac   : > { %v2579_v60 = vpack.c.bf16 %v2578_v58, %v2577_v55 }
 0xaae   : > { %2720 = vmatmul.mubr.bf16.vlgmr.msra.gmra.mxu1 %v2579_v60 }
 0xb6e   : > { %v2721_v18 = vpop.f32.mrf.mxu1 }
 0xb6f   : > { %v2722_v20 = vadd.f32 %v2721_v18, %v2600_v16 }
 0xb70   : > { %v2723_v21 = vpop.f32.mrf.mxu1 }
 0xb71   : > { %v3282_v29 = vmul.f32 -1.702, %v2722_v20  ;;  %v2724_v22 = vadd.f32 %v2723_v21, %v2604_v17 }
 0xb72   : > { %v2725_v27 = vpop.f32.mrf.mxu1 }
 0xb73   : > { %v2738_v28 = vmul.f32 1.442695, %v3282_v29  ;;  %v3283_v30 = vmul.f32 -1.702, %v2724_v22  ;;  %v2726_v32 = vadd.f32 %v2725_v27, %v2600_v16 }
 0xb74   : > { %v2727_v33 = vpop.f32.mrf.mxu1 }
 0xb75   : > { %v2740_v34 = vmul.f32 1.442695, %v3283_v30  ;;  %v3284_v35 = vmul.f32 -1.702, %v2726_v32  ;;  %v2728_v48 = vadd.f32 %v2727_v33, %v2604_v17  ;;  %3672 = vpow2.f32 %v2738_v28 }
 0xb77   : > { %3674 = vpow2.f32 %v2740_v34  ;;  %v2742_v36 = vmul.f32 1.442695, %v3284_v35  ;;  %v3285_v57 = vmul.f32 -1.702, %v2728_v48 }
 0xb79   : > { %3676 = vpow2.f32 %v2742_v36  ;;  %v2744_v56 = vmul.f32 1.442695, %v3285_v57 }
 0xb7b   : > { %3678 = vpow2.f32 %v2744_v56 }
 0xb82   : > { %v3673_v59 = vpop.eup %3672 }
 0xb83   : > { %v2746_v39 = vadd.f32 1.0, %v3673_v59 }
 0xb84   : > { %v3675_v37 = vpop.eup %3674 }
 0xb85   : > { %v2747_v38 = vadd.f32 1.0, %v3675_v37 }
 0xb86   : > { %v3677_v11 = vpop.eup %3676 }
 0xb87   : > { %v2748_v50 = vadd.f32 1.0, %v3677_v11  ;;  %3680 = vrcp.f32 %v2747_v38 }
 0xb88   : > { %v3679_v40 = vpop.eup %3678 }
 0xb89   : > { %3682 = vrcp.f32 %v2748_v50  ;;  %v2749_v41 = vadd.f32 1.0, %v3679_v40 }
 0xb8a   : > { %3684 = vrcp.f32 %v2746_v39 }
 0xb8b   : > { %3686 = vrcp.f32 %v2749_v41 }
 0xb94   : > { %v3681_v42 = vpop.eup %3680 }
 0xb95   : > { %v2759_v45 = vmul.f32 %v3681_v42, %v2724_v22 }
 0xb96   : > { %v3683_v12 = vpop.eup %3682 }
 0xb97   : > { %v3685_v6 = vpop.eup %3684  ;;  %v2760_v44 = vmul.f32 %v3683_v12, %v2726_v32 }
 0xb98   : > { %v3687_v43 = vpop.eup %3686  ;;  %v2758_v47 = vmul.f32 %v3685_v6, %v2722_v20 }
 0xb99   : > { %v2761_v46 = vmul.f32 %v3687_v43, %v2728_v48 }
 0xb9a   : > { %v2762_v0 = vpack.c.bf16 %v2760_v44, %v2758_v47 }
 0xb9b   : > { %v2763_v49 = vpack.c.bf16 %v2761_v46, %v2759_v45 }
 0xb9d   : > { %2930 = vmatprep.mubr.bf16.mxu0 %v2763_v49 }
 0xb9e   : > { %2931 = vmatmul.mubr.bf16.vlgmr.msra.gmra.mxu0 %v2762_v0 }
 0xc5e   : > { %v3365_v51 = vpop.f32.mrf.mxu0 }
 0xc60   : > { %v3366_v53 = vpop.f32.mrf.mxu0 }
 0xc61   : > { %v3367_v54 = vadd.f32 %v3366_v53, %v3365_v51 }
 0xc62   : > { %v3368_v55 = vpop.f32.mrf.mxu0 }
 0xc63   : > { %v2933_v58 = vadd.f32 %v3367_v54, %v3286_v52 }
 0xc64   : > { %v3369_v60 = vpop.f32.mrf.mxu0 }
 0xc65   : > { %v2939_v61 = vadd.f32 %v2933_v58, %v4664_v10  ;;  %v3370_v62 = vadd.f32 %v3369_v60, %v3368_v55 }
 0xc67   : > { %2941 = vst [vmem:[#allocation2] sm:$0xff] %v2939_v61  ;;  %v2936_v63 = vadd.f32 %v3370_v62, %v3286_v52  ;;  %2946 = sbr.rel (%p3303_p4) target bundleno = 3500 (0xdac), region = 88 }
 0xc69   : > { %v2940_v7 = vadd.f32 %v2936_v63, %v4667_v26 }
 0xc6b   : > { %2942 = vst [vmem:[#allocation2 + $0x8] sm:$0xff] %v2940_v7 }
 0xc6c   : > { %2947 = vst [vmem:[#allocation15] sm:$0xff] %v4343_v2  ;;  %2948 = vst [vmem:[#allocation15 + $0x8] sm:$0xff] %v4345_v3  ;;  %vm2954_vm3 = vcmask 1040384   ;;  %v2952_v21 = vld [vmem:[%s4777_s8] sm:$0x1] }
 0xc6d   : > { %v2953_v22 = vld [vmem:[%s4777_s8 + $0x1] sm:$0x1]  ;;  %v2975_v30 = vld [vmem:[%s4777_s8] sm:$0x1] }
 0xc6e   : > { %v2976_v34 = vld [vmem:[%s4777_s8 + $0x1] sm:$0x1] }
 0xc72   : > { %v2951_v19 = vld [vmem:[%s2950_s15] sm:$0x1]  ;;  %v3305_v1 = vld [vmem:[%s3094_s13 + $0x8] sm:$0x1] }
 0xc73   : > { %v2955_v10 = vsel %vm2954_vm3, %v2951_v19, 0.0  ;;  %v2977_v26 = vsel %vm2954_vm3, %v3305_v1, 0.0 }
 0xc74   : > { %2956 = vadd.xlane.f32.xlu0 %v2955_v10 }
 0xc78   : > { %2978 = vadd.xlane.f32.xlu0 %v2977_v26 }
 0xcfd   : > { %v2957_v24 = vpop.xlane.xlu0 %2956 }
 0xcfe   : > { %v2958_v4 = vmul.f32 0.0078125, %v2957_v24 }
 0xd00   : > { %v2959_v5 = vsub.f32 %v2951_v19, %v2958_v4 }
 0xd01   : > { %v2979_v8 = vpop.xlane.xlu0 %2978 }
 0xd02   : > { %v2980_v31 = vmul.f32 0.0078125, %v2979_v8  ;;  %v2960_v2 = vmul.f32 %v2959_v5, %v2959_v5 }
 0xd04   : > { %v2981_v9 = vsub.f32 %v3305_v1, %v2980_v31  ;;  %v2961_v3 = vsel %vm2954_vm3, %v2960_v2, 0.0 }
 0xd05   : > { %2962 = vadd.xlane.f32.xlu1 %v2961_v3 }
 0xd06   : > { %v2982_v13 = vmul.f32 %v2981_v9, %v2981_v9 }
 0xd08   : > { %v2983_v14 = vsel %vm2954_vm3, %v2982_v13, 0.0 }
 0xd09   : > { %2984 = vadd.xlane.f32.xlu1 %v2983_v14 }
 0xd8e   : > { %v2963_v23 = vpop.xlane.xlu1 %2962 }
 0xd8f   : > { %v2964_v25 = vmul.f32 0.0078125, %v2963_v23 }
 0xd91   : > { %v2965_v15 = vadd.f32 1e-05, %v2964_v25 }
 0xd92   : > { %v2985_v16 = vpop.xlane.xlu1 %2984 }
 0xd93   : > { %3690 = vrsqrt.f32 %v2965_v15  ;;  %v2986_v17 = vmul.f32 0.0078125, %v2985_v16 }
 0xd95   : > { %v2987_v18 = vadd.f32 1e-05, %v2986_v17 }
 0xd97   : > { %3692 = vrsqrt.f32 %v2987_v18 }
 0xda0   : > { %v3691_v20 = vpop.eup %3690 }
 0xda1   : > { %v2967_v29 = vmul.f32 %v3691_v20, %v2959_v5 }
 0xda3   : > { %v2968_v27 = vmul.f32 %v2967_v29, %v2952_v21 }
 0xda4   : > { %v3693_v28 = vpop.eup %3692 }
 0xda5   : > { %v2969_v32 = vadd.f32 %v2968_v27, %v2953_v22  ;;  %v2989_v33 = vmul.f32 %v3693_v28, %v2981_v9 }
 0xda7   : > { %2970 = vst [vmem:[#allocation16] sm:$0x1] %v2969_v32  ;;  %v2990_v35 = vmul.f32 %v2989_v33, %v2975_v30 }
 0xda9   : > { %v2991_v48 = vadd.f32 %v2990_v35, %v2976_v34 }
 0xdab   : > { %2992 = vst [vmem:[#allocation16 + $0x1] sm:$0x1] %v2991_v48 }
 0xdac PF: > { %p3508_p9 = scmp.eq.s32.totalorder %s4097_s0, 2  ;;  %s4016_s26 = smov [#allocation15]  }
 0xdad   : > { %s2999_s21 = sshll.u32 %s4016_s26, 4  ;;  %s3000_s21 = int_to_ptr.vmem [resolvable:$true] %s2999_s21 }
 0xdae   : > { %s3894_s11 = scalar_lea.vmem %s3000_s21, 256  ;;  %p3901_p1 = scmp.lt.s32.totalorder %s3000_s21, %s3000_s21 }
 0xdaf   : > { %p3895_p8 = scmp.ne.s32.totalorder %s3000_s21, %s3894_s11  ;;  %p3902_p13 = scmp.lt.s32.totalorder %s3894_s11, %s3894_s11 }
 0xdb1   : > { %p3896_p12 = pnand %p3895_p8, %p3508_p9  ;;  %p3903_p2 = por %p3902_p13, %p3901_p1 }
 0xdb3   : > { %p3897_p10 = pneg %p3896_p12 }
 0xdb5   : > { %p3904_p3 = pnand %p3903_p2, %p3897_p10 }
 0xdb7   : > { %3907 = shalt.err (!%p3904_p3)
}
 0xdb8   : > { %s4017_s18 = smov 128   ;;  %s4018_s22 = smov 8  }
 0xdb9   : > { %s4815_s27 = sld [smem:[#allocation28_spill]]  ;;  %s4019_s24 = smov [#allocation16]  }
 0xdba   : > { %s3013_s25 = sshll.u32 %s4019_s24, 4  ;;  %s3014_s25 = int_to_ptr.vmem [resolvable:$true] %s3013_s25 }
 0xdbb   : > { %s3918_s29 = scalar_lea.vmem %s3014_s25, 32  ;;  %p3925_p0 = scmp.lt.s32.totalorder %s3014_s25, %s3014_s25 }
 0xdbc   : > { %p3919_p5 = scmp.ne.s32.totalorder %s3014_s25, %s3918_s29  ;;  %p3926_p11 = scmp.lt.s32.totalorder %s3918_s29, %s3918_s29 }
 0xdbe   : > { %p3920_p6 = pnand %p3919_p5, %p3508_p9  ;;  %p3927_p4 = por %p3926_p11, %p3925_p0 }
 0xdbf   : > { %3473 = dma.vmem_to_hbm [thread:$0]  (%p3508_p9), %s3000_s21, 256, %s4815_s27, [#allocation7], %s4017_s18, %s4017_s18, %s4018_s22  }
 0xdc0   : > { %p3921_p7 = pneg %p3920_p6 }
 0xdc2   : > { %p3928_p8 = pnand %p3927_p4, %p3921_p7 }
 0xdc4   : > { %3931 = shalt.err (!%p3928_p8)
}
 0xdc5   : > { %s4816_s13 = sld [smem:[#allocation29_spill]] }
 0xdcb   : > { %3475 = dma.vmem_to_hbm [thread:$0]  (%p3508_p9), %s3014_s25, 32, %s4816_s13, [#allocation17]  }
 0xdcc   : > { %3973 = dma.done.wait (%p3508_p9), [#allocation7], 256  }
 0xdcd   : > { %3975 = vsyncadd (%p3508_p9), [#allocation7], 4294967040 }
 0xdce   : > { %3977 = dma.done.wait (%p3508_p9), [#allocation17], 32  }
 0xdcf   : > { %3979 = vsyncadd (%p3508_p9), [#allocation17], 4294967264 }
 0xdd0 PF: > { %s4817_s19 = sld [smem:[#allocation25_spill]]  ;;  %s4820_s16 = smov %s3986_s17 }
 0xdd1   : > { %s4818_s20 = sld [smem:[#allocation24_spill]] }
 0xdd2   : > { %s4819_s18 = sld [smem:[#allocation26_spill]] }
 0xdd6   : > { %p26_p12 = scmp.ge.s32.totalorder %s4817_s19, 5  }
 0xdd7   : > { %s4821_s17 = smov %s4818_s20 }
 0xdd8   :  { %28 = sbr.rel (!%p26_p12) target bundleno = 13 (0xd), region = 158 }
 0xddd   :  { %3030 = vsyncpa [#allocation6], 1 }
 0xdde   :  { %3032 = vsyncpa [#allocation6 + $0x1], 1 }
 0xddf   :  { %3033 = vsyncpa [#allocation9], 1 }
 0xde0   :  { %3034 = vsyncpa [#allocation7], 1 }
 0xde1   :  { %3036 = vsyncpa [#allocation7 + $0x1], 1 }
 0xde2   :  { %3037 = vsyncpa [#allocation17], 1 }

</bundles_post_ra>
